<compile_context>
chip_gen: v7x
topology: tpu7x:2x2x1
jax: 0.10.0
libtpu: 0.0.40
codegen_flags: <defaults>
</compile_context>

<pallas_src>
import functools

import jax
import jax.numpy as jnp
from jax.experimental import pallas as pl
from jax.experimental.pallas import tpu as pltpu


def dgqn_kernel(num_layers,
                obs_ref, A_ref, R_ref,
                w1_ref, b1_ref, w2_ref, b2_ref,
                wc1c_ref, bc1c_ref, wc2bd_ref, bc2c_ref,
                wc3_ref, bc3_ref, wc4_ref, bc4_ref,
                w3_ref, b3_ref, w4_ref, b4_ref,
                out_ref):
    f32 = jnp.float32
    emb = w1_ref.shape[1]

    obs = obs_ref[...]                    # [Bblk*E, in_dim]  (rows = (graph, edge))
    # A stored bf16 (values 0/1 -> exact); cast back to f32 so all VPU/MXU work
    # stays f32 (v5e has no bf16 VALU) while HBM->VMEM bytes are halved.
    A = A_ref[...].astype(f32)            # [Bblk*N, Bblk*E]  block-diag dst incidence

    # --- edge-feature MLP on all Bblk graphs' edges at once ---
    he = jnp.dot(obs, w1_ref[...], preferred_element_type=f32) + b1_ref[...]
    he = jnp.maximum(he, 0.0)
    he = jnp.dot(he, w2_ref[...], preferred_element_type=f32) + b2_ref[...]

    h = None
    if num_layers > 0:
        # Fused per-layer edge transforms: every conv layer consumes the ORIGINAL
        # he (matches the torch code), so all layers' linear1 are concatenated
        # along the output axis and all linear2 form one block-diagonal matrix.
        he1 = jnp.dot(he, wc1c_ref[...], preferred_element_type=f32) + bc1c_ref[...]
        he1 = jnp.maximum(he1, 0.0)
        he2 = jnp.dot(he1, wc2bd_ref[...], preferred_element_type=f32) + bc2c_ref[...]

        # update_all(v_mul_e('h','he','m'), sum('m','h')) for ALL layers and ALL
        # graphs of the block in one MXU pass:
        #   agg_all[(b,v), l*emb:(l+1)*emb] = sum_{e->v in graph b} he_l[(b,e), :]
        agg_all = jnp.dot(A, he2, preferred_element_type=f32)   # [Bblk*N, L*emb]

    for layer in range(num_layers):
        agg = agg_all[:, layer * emb:(layer + 1) * emb]
        # layer 0: h is all-ones, so h * agg == agg -> skip the VPU multiply
        h_new = agg if layer == 0 else h * agg
        # node MLP inside the conv
        h_new = jnp.dot(h_new, wc3_ref[layer], preferred_element_type=f32) + bc3_ref[layer]
        h_new = jnp.maximum(h_new, 0.0)
        h_new = jnp.dot(h_new, wc4_ref[layer], preferred_element_type=f32) + bc4_ref[layer]
        # outer relu applied by DGQN.forward after each conv
        h = jnp.maximum(h_new, 0.0)

    if h is None:                         # num_layers == 0 corner case
        h = jnp.ones((A_ref.shape[0], emb), f32)

    # --- graph readout: dgl.sum_nodes for every graph in the block via a
    # block-ones matmul (MXU; avoids a sublane-splitting reshape + reduce) ---
    hg = jnp.dot(R_ref[...], h, preferred_element_type=f32)     # [Bblk, emb]

    # --- output head (w4/b4 are lane-padded to a multiple of 128) ---
    hg = jnp.dot(hg, w3_ref[...], preferred_element_type=f32) + b3_ref[...]
    hg = jnp.maximum(hg, 0.0)
    out_ref[...] = jnp.dot(hg, w4_ref[...], preferred_element_type=f32) + b4_ref[...]


def _const_index_map(ndim):
    zeros = (0,) * ndim
    return lambda g: zeros


def dgqn_forward(params, obs, A, *, num_layers, act_dim):
    """obs: [B, E, in_dim], A: [B, N, E] (A[b,v,e]=1 iff dst(e)=v)  ->  [B, act_dim]."""
    B, E, in_dim = obs.shape
    _, N, _ = A.shape
    emb = params["w1"].shape[1]
    f32 = jnp.float32

    # Fold Bblk graphs into the matmul row dimension; keep >=2 grid steps when
    # possible so the batch still shards across the 2 TensorCores on v7x
    # (harmless on single-TC v5e/v6e).
    grid_b = 2 if (B % 2 == 0 and B >= 2) else 1
    Bblk = B // grid_b

    # --- per-grid-step inputs ---
    obs2d = obs.reshape(B * E, in_dim).astype(f32)
    # block-diagonal dst incidence per grid step, stored bf16 (0/1 -> exact)
    A_g = A.reshape(grid_b, Bblk, N, E).astype(jnp.bfloat16)
    A_bd = jnp.zeros((grid_b, Bblk * N, Bblk * E), jnp.bfloat16)
    for i in range(Bblk):
        A_bd = A_bd.at[:, i * N:(i + 1) * N, i * E:(i + 1) * E].set(A_g[:, i])
    # readout matrix: hg[b] = sum over graph b's node rows
    R = jnp.kron(jnp.eye(Bblk, dtype=f32), jnp.ones((1, N), f32))   # [Bblk, Bblk*N]

    # --- fused conv-layer edge weights ---
    L = num_layers
    if L > 0:
        wc1c = jnp.concatenate([params["wc1"][l] for l in range(L)], axis=1)  # [emb, L*emb]
        bc1c = params["bc1"].reshape(1, L * emb)
        bc2c = params["bc2"].reshape(1, L * emb)
        wc2bd = jnp.zeros((L * emb, L * emb), f32)
        for l in range(L):
            wc2bd = wc2bd.at[l * emb:(l + 1) * emb, l * emb:(l + 1) * emb].set(
                params["wc2"][l])
        wc3, bc3, wc4, bc4 = params["wc3"], params["bc3"], params["wc4"], params["bc4"]
    else:  # dummies; the kernel skips the conv loop entirely
        wc1c = jnp.zeros((emb, emb), f32); bc1c = jnp.zeros((1, emb), f32)
        wc2bd = jnp.zeros((emb, emb), f32); bc2c = jnp.zeros((1, emb), f32)
        wc3 = jnp.zeros((1, emb, emb), f32); bc3 = jnp.zeros((1, 1, emb), f32)
        wc4 = jnp.zeros((1, emb, emb), f32); bc4 = jnp.zeros((1, 1, emb), f32)

    # lane-dense output head: pad act_dim to a multiple of 128 with zero weights
    act_pad = ((act_dim + 127) // 128) * 128
    w4 = jnp.zeros((emb, act_pad), f32).at[:, :act_dim].set(params["w4"])
    b4 = jnp.zeros((1, act_pad), f32).at[:, :act_dim].set(params["b4"])

    consts = (
        R,
        params["w1"], params["b1"], params["w2"], params["b2"],
        wc1c, bc1c, wc2bd, bc2c,
        wc3, bc3, wc4, bc4,
        params["w3"], params["b3"], w4, b4,
    )

    in_specs = [
        # per-grid-step inputs: Bblk graphs' edges / block-diag incidence
        pl.BlockSpec((Bblk * E, in_dim), lambda g: (g, 0)),
        pl.BlockSpec((None, Bblk * N, Bblk * E), lambda g: (g, 0, 0)),
    ]
    # constants: constant block index -> fetched once, VMEM-resident across grid.
    # TODO(synk): pipeline_mode=pl.Buffered(1) would drop the unused second
    # buffer for these invariant operands; negligible at emb=32, so left default.
    in_specs += [pl.BlockSpec(c.shape, _const_index_map(c.ndim)) for c in consts]

    out = pl.pallas_call(
        functools.partial(dgqn_kernel, num_layers),
        grid=(grid_b,),
        out_shape=jax.ShapeDtypeStruct((grid_b, Bblk, act_pad), f32),
        in_specs=in_specs,
        out_specs=pl.BlockSpec((None, Bblk, act_pad), lambda g: (g, 0, 0)),
        compiler_params=pltpu.CompilerParams(
            dimension_semantics=("parallel",)),   # shards batch across TCs on v7x
    )(obs2d, A_bd, *consts)

    return out.reshape(B, act_pad)[:, :act_dim]


def dgqn_reference(params, obs, A, *, num_layers):
    """Pure-JAX single-graph reference for correctness checking."""
    he = jnp.maximum(obs @ params["w1"] + params["b1"], 0.0)
    he = he @ params["w2"] + params["b2"]
    h = jnp.ones((A.shape[0], params["w1"].shape[1]), jnp.float32)
    for l in range(num_layers):
        he_l = jnp.maximum(he @ params["wc1"][l] + params["bc1"][l], 0.0)
        he_l = he_l @ params["wc2"][l] + params["bc2"][l]
        h_new = h * (A @ he_l)
        h_new = jnp.maximum(h_new @ params["wc3"][l] + params["bc3"][l], 0.0)
        h_new = h_new @ params["wc4"][l] + params["bc4"][l]
        h = jnp.maximum(h_new, 0.0)
    hg = jnp.sum(h, axis=0, keepdims=True)
    hg = jnp.maximum(hg @ params["w3"] + params["b3"], 0.0)
    return hg @ params["w4"] + params["b4"]


def init_params(key, in_dim, emb_dim, act_dim, num_layers):
    keys = jax.random.split(key, 18)
    s = 0.1

    def w(k, shape):
        return (s * jax.random.normal(k, shape)).astype(jnp.float32)

    return {
        # DGQN edge MLP
        "w1": w(keys[0], (in_dim, emb_dim)),  "b1": w(keys[1], (1, emb_dim)),
        "w2": w(keys[2], (emb_dim, emb_dim)), "b2": w(keys[3], (1, emb_dim)),
        # stacked GNNConv layers
        "wc1": w(keys[4], (num_layers, emb_dim, emb_dim)),
        "bc1": w(keys[5], (num_layers, 1, emb_dim)),
        "wc2": w(keys[6], (num_layers, emb_dim, emb_dim)),
        "bc2": w(keys[7], (num_layers, 1, emb_dim)),
        "wc3": w(keys[8], (num_layers, emb_dim, emb_dim)),
        "bc3": w(keys[9], (num_layers, 1, emb_dim)),
        "wc4": w(keys[10], (num_layers, emb_dim, emb_dim)),
        "bc4": w(keys[11], (num_layers, 1, emb_dim)),
        # output head
        "w3": w(keys[12], (emb_dim, emb_dim)), "b3": w(keys[13], (1, emb_dim)),
        "w4": w(keys[14], (emb_dim, act_dim)), "b4": w(keys[15], (1, act_dim)),
    }


if __name__ == "__main__":
    in_dim, emb_dim, act_dim, num_layers = 8, 32, 4, 2
    num_nodes, num_edges, batch = 16, 32, 8

    key = jax.random.PRNGKey(0)
    k_param, k_obs, k_dst = jax.random.split(key, 3)

    params = init_params(k_param, in_dim, emb_dim, act_dim, num_layers)

    # synthetic batch of graphs: edge features + dst-incidence matrices
    obs = jax.random.normal(k_obs, (batch, num_edges, in_dim), dtype=jnp.float32)
    dst = jax.random.randint(k_dst, (batch, num_edges), 0, num_nodes)
    A = jax.vmap(
        lambda d: jnp.zeros((num_nodes, num_edges), jnp.float32)
        .at[d, jnp.arange(num_edges)].set(1.0)
    )(dst)

    out = dgqn_forward(params, obs, A, num_layers=num_layers, act_dim=act_dim)
    out = jax.block_until_ready(out)

    ref = jax.vmap(
        lambda o, a: dgqn_reference(params, o, a, num_layers=num_layers)[0]
    )(obs, A)

    assert out.shape == (batch, act_dim), out.shape
    assert jnp.allclose(out, ref, atol=2e-4, rtol=2e-4), (out, ref)

    print("KERNEL_OK")
</pallas_src>

<mosaic_0001>
module attributes {stable_mosaic.version = 11 : i64} {
  func.func @dgqn_kernel(%arg0: i32, %arg1: memref<128x8xf32, #tpu.memory_space<vmem>>, %arg2: memref<1x64x128xbf16, #tpu.memory_space<vmem>>, %arg3: memref<4x64xf32, #tpu.memory_space<vmem>>, %arg4: memref<8x32xf32, #tpu.memory_space<vmem>>, %arg5: memref<1x32xf32, #tpu.memory_space<vmem>>, %arg6: memref<32x32xf32, #tpu.memory_space<vmem>>, %arg7: memref<1x32xf32, #tpu.memory_space<vmem>>, %arg8: memref<32x64xf32, #tpu.memory_space<vmem>>, %arg9: memref<1x64xf32, #tpu.memory_space<vmem>>, %arg10: memref<64x64xf32, #tpu.memory_space<vmem>>, %arg11: memref<1x64xf32, #tpu.memory_space<vmem>>, %arg12: memref<2x32x32xf32, #tpu.memory_space<vmem>>, %arg13: memref<2x1x32xf32, #tpu.memory_space<vmem>>, %arg14: memref<2x32x32xf32, #tpu.memory_space<vmem>>, %arg15: memref<2x1x32xf32, #tpu.memory_space<vmem>>, %arg16: memref<32x32xf32, #tpu.memory_space<vmem>>, %arg17: memref<1x32xf32, #tpu.memory_space<vmem>>, %arg18: memref<32x128xf32, #tpu.memory_space<vmem>>, %arg19: memref<1x128xf32, #tpu.memory_space<vmem>>, %arg20: memref<1x4x128xf32, #tpu.memory_space<vmem>>) attributes {dimension_semantics = [#tpu.dimension_semantics<parallel>], iteration_bounds = array<i64: 2>, scalar_prefetch = 0 : i64, scratch_operands = 0 : i64, tpu.core_type = #tpu.core_type<tc>, window_params = [{transform_indices = @transform_0, window_bounds = array<i64: 128, 8>}, {transform_indices = @transform_1, window_bounds = array<i64: 1, 64, 128>}, {pipeline_mode = #tpu.pipeline_mode<synchronous>, transform_indices = @transform_2, window_bounds = array<i64: 4, 64>}, {pipeline_mode = #tpu.pipeline_mode<synchronous>, transform_indices = @transform_3, window_bounds = array<i64: 8, 32>}, {pipeline_mode = #tpu.pipeline_mode<synchronous>, transform_indices = @transform_4, window_bounds = array<i64: 1, 32>}, {pipeline_mode = #tpu.pipeline_mode<synchronous>, transform_indices = @transform_5, window_bounds = array<i64: 32, 32>}, {pipeline_mode = #tpu.pipeline_mode<synchronous>, transform_indices = @transform_6, window_bounds = array<i64: 1, 32>}, {pipeline_mode = #tpu.pipeline_mode<synchronous>, transform_indices = @transform_7, window_bounds = array<i64: 32, 64>}, {pipeline_mode = #tpu.pipeline_mode<synchronous>, transform_indices = @transform_8, window_bounds = array<i64: 1, 64>}, {pipeline_mode = #tpu.pipeline_mode<synchronous>, transform_indices = @transform_9, window_bounds = array<i64: 64, 64>}, {pipeline_mode = #tpu.pipeline_mode<synchronous>, transform_indices = @transform_10, window_bounds = array<i64: 1, 64>}, {pipeline_mode = #tpu.pipeline_mode<synchronous>, transform_indices = @transform_11, window_bounds = array<i64: 2, 32, 32>}, {pipeline_mode = #tpu.pipeline_mode<synchronous>, transform_indices = @transform_12, window_bounds = array<i64: 2, 1, 32>}, {pipeline_mode = #tpu.pipeline_mode<synchronous>, transform_indices = @transform_13, window_bounds = array<i64: 2, 32, 32>}, {pipeline_mode = #tpu.pipeline_mode<synchronous>, transform_indices = @transform_14, window_bounds = array<i64: 2, 1, 32>}, {pipeline_mode = #tpu.pipeline_mode<synchronous>, transform_indices = @transform_15, window_bounds = array<i64: 32, 32>}, {pipeline_mode = #tpu.pipeline_mode<synchronous>, transform_indices = @transform_16, window_bounds = array<i64: 1, 32>}, {pipeline_mode = #tpu.pipeline_mode<synchronous>, transform_indices = @transform_17, window_bounds = array<i64: 32, 128>}, {pipeline_mode = #tpu.pipeline_mode<synchronous>, transform_indices = @transform_18, window_bounds = array<i64: 1, 128>}, {transform_indices = @transform_19, window_bounds = array<i64: 1, 4, 128>}]} {
    %c0 = arith.constant 0 : index
    %c0_0 = arith.constant 0 : index
    %0 = vector.load %arg1[%c0, %c0_0] : memref<128x8xf32, #tpu.memory_space<vmem>>, vector<128x8xf32>
    %c0_1 = arith.constant 0 : index
    %c0_2 = arith.constant 0 : index
    %c0_3 = arith.constant 0 : index
    %1 = vector.load %arg2[%c0_1, %c0_2, %c0_3] : memref<1x64x128xbf16, #tpu.memory_space<vmem>>, vector<1x64x128xbf16>
    %2 = vector.shape_cast %1 : vector<1x64x128xbf16> to vector<64x128xbf16>
    %3 = arith.extf %2 : vector<64x128xbf16> to vector<64x128xf32>
    %c0_4 = arith.constant 0 : index
    %c0_5 = arith.constant 0 : index
    %4 = vector.load %arg4[%c0_4, %c0_5] : memref<8x32xf32, #tpu.memory_space<vmem>>, vector<8x32xf32>
    %cst = arith.constant dense<0.000000e+00> : vector<128x32xf32>
    %5 = tpu.matmul %0, %4, %cst {dimension_numbers = #tpu.dot_dimension_numbers<[1], [0], [0], [1], [0, 0, 1, 1], [], []>} : vector<128x8xf32>, vector<8x32xf32>, vector<128x32xf32> -> vector<128x32xf32>
    %c0_6 = arith.constant 0 : index
    %c0_7 = arith.constant 0 : index
    %6 = vector.load %arg5[%c0_6, %c0_7] : memref<1x32xf32, #tpu.memory_space<vmem>>, vector<1x32xf32>
    %7 = vector.broadcast %6 : vector<1x32xf32> to vector<128x32xf32>
    %8 = arith.addf %5, %7 : vector<128x32xf32>
    %cst_8 = arith.constant 0.000000e+00 : f32
    %9 = vector.broadcast %cst_8 : f32 to vector<128x32xf32>
    %10 = arith.maximumf %8, %9 : vector<128x32xf32>
    %c0_9 = arith.constant 0 : index
    %c0_10 = arith.constant 0 : index
    %11 = vector.load %arg6[%c0_9, %c0_10] : memref<32x32xf32, #tpu.memory_space<vmem>>, vector<32x32xf32>
    %cst_11 = arith.constant dense<0.000000e+00> : vector<128x32xf32>
    %12 = tpu.matmul %10, %11, %cst_11 {dimension_numbers = #tpu.dot_dimension_numbers<[1], [0], [0], [1], [0, 0, 1, 1], [], []>} : vector<128x32xf32>, vector<32x32xf32>, vector<128x32xf32> -> vector<128x32xf32>
    %c0_12 = arith.constant 0 : index
    %c0_13 = arith.constant 0 : index
    %13 = vector.load %arg7[%c0_12, %c0_13] : memref<1x32xf32, #tpu.memory_space<vmem>>, vector<1x32xf32>
    %14 = vector.broadcast %13 : vector<1x32xf32> to vector<128x32xf32>
    %15 = arith.addf %12, %14 : vector<128x32xf32>
    %c0_14 = arith.constant 0 : index
    %c0_15 = arith.constant 0 : index
    %16 = vector.load %arg8[%c0_14, %c0_15] : memref<32x64xf32, #tpu.memory_space<vmem>>, vector<32x64xf32>
    %cst_16 = arith.constant dense<0.000000e+00> : vector<128x64xf32>
    %17 = tpu.matmul %15, %16, %cst_16 {dimension_numbers = #tpu.dot_dimension_numbers<[1], [0], [0], [1], [0, 0, 1, 1], [], []>} : vector<128x32xf32>, vector<32x64xf32>, vector<128x64xf32> -> vector<128x64xf32>
    %c0_17 = arith.constant 0 : index
    %c0_18 = arith.constant 0 : index
    %18 = vector.load %arg9[%c0_17, %c0_18] : memref<1x64xf32, #tpu.memory_space<vmem>>, vector<1x64xf32>
    %19 = vector.broadcast %18 : vector<1x64xf32> to vector<128x64xf32>
    %20 = arith.addf %17, %19 : vector<128x64xf32>
    %cst_19 = arith.constant 0.000000e+00 : f32
    %21 = vector.broadcast %cst_19 : f32 to vector<128x64xf32>
    %22 = arith.maximumf %20, %21 : vector<128x64xf32>
    %c0_20 = arith.constant 0 : index
    %c0_21 = arith.constant 0 : index
    %23 = vector.load %arg10[%c0_20, %c0_21] : memref<64x64xf32, #tpu.memory_space<vmem>>, vector<64x64xf32>
    %cst_22 = arith.constant dense<0.000000e+00> : vector<128x64xf32>
    %24 = tpu.matmul %22, %23, %cst_22 {dimension_numbers = #tpu.dot_dimension_numbers<[1], [0], [0], [1], [0, 0, 1, 1], [], []>} : vector<128x64xf32>, vector<64x64xf32>, vector<128x64xf32> -> vector<128x64xf32>
    %c0_23 = arith.constant 0 : index
    %c0_24 = arith.constant 0 : index
    %25 = vector.load %arg11[%c0_23, %c0_24] : memref<1x64xf32, #tpu.memory_space<vmem>>, vector<1x64xf32>
    %26 = vector.broadcast %25 : vector<1x64xf32> to vector<128x64xf32>
    %27 = arith.addf %24, %26 : vector<128x64xf32>
    %cst_25 = arith.constant dense<0.000000e+00> : vector<64x64xf32>
    %28 = tpu.matmul %3, %27, %cst_25 {dimension_numbers = #tpu.dot_dimension_numbers<[1], [0], [0], [1], [0, 0, 1, 1], [], []>} : vector<64x128xf32>, vector<128x64xf32>, vector<64x64xf32> -> vector<64x64xf32>
    %29 = vector.extract_strided_slice %28 {offsets = [0, 0], sizes = [64, 32], strides = [1, 1]} : vector<64x64xf32> to vector<64x32xf32>
    %c0_26 = arith.constant 0 : index
    %c0_27 = arith.constant 0 : index
    %c0_28 = arith.constant 0 : index
    %30 = vector.load %arg12[%c0_26, %c0_27, %c0_28] : memref<2x32x32xf32, #tpu.memory_space<vmem>>, vector<1x32x32xf32>
    %31 = vector.shape_cast %30 : vector<1x32x32xf32> to vector<32x32xf32>
    %cst_29 = arith.constant dense<0.000000e+00> : vector<64x32xf32>
    %32 = tpu.matmul %29, %31, %cst_29 {dimension_numbers = #tpu.dot_dimension_numbers<[1], [0], [0], [1], [0, 0, 1, 1], [], []>} : vector<64x32xf32>, vector<32x32xf32>, vector<64x32xf32> -> vector<64x32xf32>
    %c0_30 = arith.constant 0 : index
    %c0_31 = arith.constant 0 : index
    %c0_32 = arith.constant 0 : index
    %33 = vector.load %arg13[%c0_30, %c0_31, %c0_32] : memref<2x1x32xf32, #tpu.memory_space<vmem>>, vector<1x1x32xf32>
    %34 = vector.shape_cast %33 : vector<1x1x32xf32> to vector<1x32xf32>
    %35 = vector.broadcast %34 : vector<1x32xf32> to vector<64x32xf32>
    %36 = arith.addf %32, %35 : vector<64x32xf32>
    %cst_33 = arith.constant 0.000000e+00 : f32
    %37 = vector.broadcast %cst_33 : f32 to vector<64x32xf32>
    %38 = arith.maximumf %36, %37 : vector<64x32xf32>
    %c0_34 = arith.constant 0 : index
    %c0_35 = arith.constant 0 : index
    %c0_36 = arith.constant 0 : index
    %39 = vector.load %arg14[%c0_34, %c0_35, %c0_36] : memref<2x32x32xf32, #tpu.memory_space<vmem>>, vector<1x32x32xf32>
    %40 = vector.shape_cast %39 : vector<1x32x32xf32> to vector<32x32xf32>
    %cst_37 = arith.constant dense<0.000000e+00> : vector<64x32xf32>
    %41 = tpu.matmul %38, %40, %cst_37 {dimension_numbers = #tpu.dot_dimension_numbers<[1], [0], [0], [1], [0, 0, 1, 1], [], []>} : vector<64x32xf32>, vector<32x32xf32>, vector<64x32xf32> -> vector<64x32xf32>
    %c0_38 = arith.constant 0 : index
    %c0_39 = arith.constant 0 : index
    %c0_40 = arith.constant 0 : index
    %42 = vector.load %arg15[%c0_38, %c0_39, %c0_40] : memref<2x1x32xf32, #tpu.memory_space<vmem>>, vector<1x1x32xf32>
    %43 = vector.shape_cast %42 : vector<1x1x32xf32> to vector<1x32xf32>
    %44 = vector.broadcast %43 : vector<1x32xf32> to vector<64x32xf32>
    %45 = arith.addf %41, %44 : vector<64x32xf32>
    %cst_41 = arith.constant 0.000000e+00 : f32
    %46 = vector.broadcast %cst_41 : f32 to vector<64x32xf32>
    %47 = arith.maximumf %45, %46 : vector<64x32xf32>
    %48 = vector.extract_strided_slice %28 {offsets = [0, 32], sizes = [64, 32], strides = [1, 1]} : vector<64x64xf32> to vector<64x32xf32>
    %49 = arith.mulf %47, %48 : vector<64x32xf32>
    %c1 = arith.constant 1 : index
    %c0_42 = arith.constant 0 : index
    %c0_43 = arith.constant 0 : index
    %50 = vector.load %arg12[%c1, %c0_42, %c0_43] : memref<2x32x32xf32, #tpu.memory_space<vmem>>, vector<1x32x32xf32>
    %51 = vector.shape_cast %50 : vector<1x32x32xf32> to vector<32x32xf32>
    %cst_44 = arith.constant dense<0.000000e+00> : vector<64x32xf32>
    %52 = tpu.matmul %49, %51, %cst_44 {dimension_numbers = #tpu.dot_dimension_numbers<[1], [0], [0], [1], [0, 0, 1, 1], [], []>} : vector<64x32xf32>, vector<32x32xf32>, vector<64x32xf32> -> vector<64x32xf32>
    %c1_45 = arith.constant 1 : index
    %c0_46 = arith.constant 0 : index
    %c0_47 = arith.constant 0 : index
    %53 = vector.load %arg13[%c1_45, %c0_46, %c0_47] : memref<2x1x32xf32, #tpu.memory_space<vmem>>, vector<1x1x32xf32>
    %54 = vector.shape_cast %53 : vector<1x1x32xf32> to vector<1x32xf32>
    %55 = vector.broadcast %54 : vector<1x32xf32> to vector<64x32xf32>
    %56 = arith.addf %52, %55 : vector<64x32xf32>
    %cst_48 = arith.constant 0.000000e+00 : f32
    %57 = vector.broadcast %cst_48 : f32 to vector<64x32xf32>
    %58 = arith.maximumf %56, %57 : vector<64x32xf32>
    %c1_49 = arith.constant 1 : index
    %c0_50 = arith.constant 0 : index
    %c0_51 = arith.constant 0 : index
    %59 = vector.load %arg14[%c1_49, %c0_50, %c0_51] : memref<2x32x32xf32, #tpu.memory_space<vmem>>, vector<1x32x32xf32>
    %60 = vector.shape_cast %59 : vector<1x32x32xf32> to vector<32x32xf32>
    %cst_52 = arith.constant dense<0.000000e+00> : vector<64x32xf32>
    %61 = tpu.matmul %58, %60, %cst_52 {dimension_numbers = #tpu.dot_dimension_numbers<[1], [0], [0], [1], [0, 0, 1, 1], [], []>} : vector<64x32xf32>, vector<32x32xf32>, vector<64x32xf32> -> vector<64x32xf32>
    %c1_53 = arith.constant 1 : index
    %c0_54 = arith.constant 0 : index
    %c0_55 = arith.constant 0 : index
    %62 = vector.load %arg15[%c1_53, %c0_54, %c0_55] : memref<2x1x32xf32, #tpu.memory_space<vmem>>, vector<1x1x32xf32>
    %63 = vector.shape_cast %62 : vector<1x1x32xf32> to vector<1x32xf32>
    %64 = vector.broadcast %63 : vector<1x32xf32> to vector<64x32xf32>
    %65 = arith.addf %61, %64 : vector<64x32xf32>
    %cst_56 = arith.constant 0.000000e+00 : f32
    %66 = vector.broadcast %cst_56 : f32 to vector<64x32xf32>
    %67 = arith.maximumf %65, %66 : vector<64x32xf32>
    %c0_57 = arith.constant 0 : index
    %c0_58 = arith.constant 0 : index
    %68 = vector.load %arg3[%c0_57, %c0_58] : memref<4x64xf32, #tpu.memory_space<vmem>>, vector<4x64xf32>
    %cst_59 = arith.constant dense<0.000000e+00> : vector<4x32xf32>
    %69 = tpu.matmul %68, %67, %cst_59 {dimension_numbers = #tpu.dot_dimension_numbers<[1], [0], [0], [1], [0, 0, 1, 1], [], []>} : vector<4x64xf32>, vector<64x32xf32>, vector<4x32xf32> -> vector<4x32xf32>
    %c0_60 = arith.constant 0 : index
    %c0_61 = arith.constant 0 : index
    %70 = vector.load %arg16[%c0_60, %c0_61] : memref<32x32xf32, #tpu.memory_space<vmem>>, vector<32x32xf32>
    %cst_62 = arith.constant dense<0.000000e+00> : vector<4x32xf32>
    %71 = tpu.matmul %69, %70, %cst_62 {dimension_numbers = #tpu.dot_dimension_numbers<[1], [0], [0], [1], [0, 0, 1, 1], [], []>} : vector<4x32xf32>, vector<32x32xf32>, vector<4x32xf32> -> vector<4x32xf32>
    %c0_63 = arith.constant 0 : index
    %c0_64 = arith.constant 0 : index
    %72 = vector.load %arg17[%c0_63, %c0_64] : memref<1x32xf32, #tpu.memory_space<vmem>>, vector<1x32xf32>
    %73 = vector.broadcast %72 : vector<1x32xf32> to vector<4x32xf32>
    %74 = arith.addf %71, %73 : vector<4x32xf32>
    %cst_65 = arith.constant 0.000000e+00 : f32
    %75 = vector.broadcast %cst_65 : f32 to vector<4x32xf32>
    %76 = arith.maximumf %74, %75 : vector<4x32xf32>
    %c0_66 = arith.constant 0 : index
    %c0_67 = arith.constant 0 : index
    %77 = vector.load %arg18[%c0_66, %c0_67] : memref<32x128xf32, #tpu.memory_space<vmem>>, vector<32x128xf32>
    %cst_68 = arith.constant dense<0.000000e+00> : vector<4x128xf32>
    %78 = tpu.matmul %76, %77, %cst_68 {dimension_numbers = #tpu.dot_dimension_numbers<[1], [0], [0], [1], [0, 0, 1, 1], [], []>} : vector<4x32xf32>, vector<32x128xf32>, vector<4x128xf32> -> vector<4x128xf32>
    %c0_69 = arith.constant 0 : index
    %c0_70 = arith.constant 0 : index
    %79 = vector.load %arg19[%c0_69, %c0_70] : memref<1x128xf32, #tpu.memory_space<vmem>>, vector<1x128xf32>
    %80 = vector.broadcast %79 : vector<1x128xf32> to vector<4x128xf32>
    %81 = arith.addf %78, %80 : vector<4x128xf32>
    %c0_71 = arith.constant 0 : index
    %c0_72 = arith.constant 0 : index
    %c0_73 = arith.constant 0 : index
    %82 = vector.load %arg20[%c0_71, %c0_72, %c0_73] : memref<1x4x128xf32, #tpu.memory_space<vmem>>, vector<1x4x128xf32>
    %83 = vector.shape_cast %82 : vector<1x4x128xf32> to vector<4x128xf32>
    %84 = vector.shape_cast %81 : vector<4x128xf32> to vector<1x4x128xf32>
    tpu.vector_store %arg20[%c0_71, %c0_72, %c0_73], %84 {strides = array<i32>} : memref<1x4x128xf32, #tpu.memory_space<vmem>>, vector<1x4x128xf32>,
    return
  }
  func.func @transform_0(%arg0: i32) -> (i32, i32) {
    %c0_i32 = arith.constant 0 : i32
    %c0_i32_0 = arith.constant 0 : i32
    return %arg0, %c0_i32 : i32, i32
  }
  func.func @transform_1(%arg0: i32) -> (i32, i32, i32) {
    %c0_i32 = arith.constant 0 : i32
    %c0_i32_0 = arith.constant 0 : i32
    %c0_i32_1 = arith.constant 0 : i32
    return %arg0, %c0_i32, %c0_i32_0 : i32, i32, i32
  }
  func.func @transform_2(%arg0: i32) -> (i32, i32) {
    %c0_i32 = arith.constant 0 : i32
    %c0_i32_0 = arith.constant 0 : i32
    %c0_i32_1 = arith.constant 0 : i32
    return %c0_i32, %c0_i32_0 : i32, i32
  }
  func.func @transform_3(%arg0: i32) -> (i32, i32) {
    %c0_i32 = arith.constant 0 : i32
    %c0_i32_0 = arith.constant 0 : i32
    %c0_i32_1 = arith.constant 0 : i32
    return %c0_i32, %c0_i32_0 : i32, i32
  }
  func.func @transform_4(%arg0: i32) -> (i32, i32) {
    %c0_i32 = arith.constant 0 : i32
    %c0_i32_0 = arith.constant 0 : i32
    %c0_i32_1 = arith.constant 0 : i32
    return %c0_i32, %c0_i32_0 : i32, i32
  }
  func.func @transform_5(%arg0: i32) -> (i32, i32) {
    %c0_i32 = arith.constant 0 : i32
    %c0_i32_0 = arith.constant 0 : i32
    %c0_i32_1 = arith.constant 0 : i32
    return %c0_i32, %c0_i32_0 : i32, i32
  }
  func.func @transform_6(%arg0: i32) -> (i32, i32) {
    %c0_i32 = arith.constant 0 : i32
    %c0_i32_0 = arith.constant 0 : i32
    %c0_i32_1 = arith.constant 0 : i32
    return %c0_i32, %c0_i32_0 : i32, i32
  }
  func.func @transform_7(%arg0: i32) -> (i32, i32) {
    %c0_i32 = arith.constant 0 : i32
    %c0_i32_0 = arith.constant 0 : i32
    %c0_i32_1 = arith.constant 0 : i32
    return %c0_i32, %c0_i32_0 : i32, i32
  }
  func.func @transform_8(%arg0: i32) -> (i32, i32) {
    %c0_i32 = arith.constant 0 : i32
    %c0_i32_0 = arith.constant 0 : i32
    %c0_i32_1 = arith.constant 0 : i32
    return %c0_i32, %c0_i32_0 : i32, i32
  }
  func.func @transform_9(%arg0: i32) -> (i32, i32) {
    %c0_i32 = arith.constant 0 : i32
    %c0_i32_0 = arith.constant 0 : i32
    %c0_i32_1 = arith.constant 0 : i32
    return %c0_i32, %c0_i32_0 : i32, i32
  }
  func.func @transform_10(%arg0: i32) -> (i32, i32) {
    %c0_i32 = arith.constant 0 : i32
    %c0_i32_0 = arith.constant 0 : i32
    %c0_i32_1 = arith.constant 0 : i32
    return %c0_i32, %c0_i32_0 : i32, i32
  }
  func.func @transform_11(%arg0: i32) -> (i32, i32, i32) {
    %c0_i32 = arith.constant 0 : i32
    %c0_i32_0 = arith.constant 0 : i32
    %c0_i32_1 = arith.constant 0 : i32
    %c0_i32_2 = arith.constant 0 : i32
    return %c0_i32, %c0_i32_0, %c0_i32_1 : i32, i32, i32
  }
  func.func @transform_12(%arg0: i32) -> (i32, i32, i32) {
    %c0_i32 = arith.constant 0 : i32
    %c0_i32_0 = arith.constant 0 : i32
    %c0_i32_1 = arith.constant 0 : i32
    %c0_i32_2 = arith.constant 0 : i32
    return %c0_i32, %c0_i32_0, %c0_i32_1 : i32, i32, i32
  }
  func.func @transform_13(%arg0: i32) -> (i32, i32, i32) {
    %c0_i32 = arith.constant 0 : i32
    %c0_i32_0 = arith.constant 0 : i32
    %c0_i32_1 = arith.constant 0 : i32
    %c0_i32_2 = arith.constant 0 : i32
    return %c0_i32, %c0_i32_0, %c0_i32_1 : i32, i32, i32
  }
  func.func @transform_14(%arg0: i32) -> (i32, i32, i32) {
    %c0_i32 = arith.constant 0 : i32
    %c0_i32_0 = arith.constant 0 : i32
    %c0_i32_1 = arith.constant 0 : i32
    %c0_i32_2 = arith.constant 0 : i32
    return %c0_i32, %c0_i32_0, %c0_i32_1 : i32, i32, i32
  }
  func.func @transform_15(%arg0: i32) -> (i32, i32) {
    %c0_i32 = arith.constant 0 : i32
    %c0_i32_0 = arith.constant 0 : i32
    %c0_i32_1 = arith.constant 0 : i32
    return %c0_i32, %c0_i32_0 : i32, i32
  }
  func.func @transform_16(%arg0: i32) -> (i32, i32) {
    %c0_i32 = arith.constant 0 : i32
    %c0_i32_0 = arith.constant 0 : i32
    %c0_i32_1 = arith.constant 0 : i32
    return %c0_i32, %c0_i32_0 : i32, i32
  }
  func.func @transform_17(%arg0: i32) -> (i32, i32) {
    %c0_i32 = arith.constant 0 : i32
    %c0_i32_0 = arith.constant 0 : i32
    %c0_i32_1 = arith.constant 0 : i32
    return %c0_i32, %c0_i32_0 : i32, i32
  }
  func.func @transform_18(%arg0: i32) -> (i32, i32) {
    %c0_i32 = arith.constant 0 : i32
    %c0_i32_0 = arith.constant 0 : i32
    %c0_i32_1 = arith.constant 0 : i32
    return %c0_i32, %c0_i32_0 : i32, i32
  }
  func.func @transform_19(%arg0: i32) -> (i32, i32, i32) {
    %c0_i32 = arith.constant 0 : i32
    %c0_i32_0 = arith.constant 0 : i32
    %c0_i32_1 = arith.constant 0 : i32
    return %arg0, %c0_i32, %c0_i32_0 : i32, i32, i32
  }
}

</mosaic_0001>

<bundles_post_ra>
// kernel: tpu_custom_call.1
= control target key start
LH: loop header
LB: loop body
LE: loop exit
PB: predicated region body
PF: predicated region fallthrough
CT: control target
= control target key end

     0   :  { %s4624_s0 = inlined_call_operand.vmem [shape: f32[256,8], index: 0, kind: input, shape index: {}]   ;;  %s4625_s1 = inlined_call_operand.vmem [shape: bf16[2,64,128], index: 1, kind: input, shape index: {}]   ;;  %s4626_s2 = inlined_call_operand.hbm [shape: f32[4,64], index: 2, kind: input, shape index: {}]   ;;  %s4627_s3 = inlined_call_operand.hbm [shape: f32[8,32], index: 3, kind: input, shape index: {}]   ;;  %s4628_s4 = inlined_call_operand.vmem [shape: f32[1,32], index: 4, kind: input, shape index: {}]   ;;  %s4629_s5 = inlined_call_operand.vmem [shape: f32[32,32], index: 5, kind: input, shape index: {}]   ;;  %s4630_s6 = inlined_call_operand.hbm [shape: f32[1,32], index: 6, kind: input, shape index: {}]   ;;  %s4631_s7 = inlined_call_operand.hbm [shape: f32[32,64], index: 7, kind: input, shape index: {}]   ;;  %s4632_s8 = inlined_call_operand.hbm [shape: f32[1,64], index: 8, kind: input, shape index: {}]   ;;  %s4633_s9 = inlined_call_operand.vmem [shape: f32[64,64], index: 9, kind: input, shape index: {}]   ;;  %s4634_s10 = inlined_call_operand.hbm [shape: f32[1,64], index: 10, kind: input, shape index: {}]   ;;  %s4635_s11 = inlined_call_operand.vmem [shape: f32[2,32,32], index: 11, kind: input, shape index: {}]   ;;  %s4636_s12 = inlined_call_operand.hbm [shape: f32[2,1,32], index: 12, kind: input, shape index: {}]   ;;  %s4637_s13 = inlined_call_operand.vmem [shape: f32[2,32,32], index: 13, kind: input, shape index: {}]   ;;  %s4638_s14 = inlined_call_operand.vmem [shape: f32[2,1,32], index: 14, kind: input, shape index: {}]   ;;  %s4639_s15 = inlined_call_operand.vmem [shape: f32[32,32], index: 15, kind: input, shape index: {}]   ;;  %s4640_s16 = inlined_call_operand.vmem [shape: f32[1,32], index: 16, kind: input, shape index: {}]   ;;  %s4641_s17 = inlined_call_operand.hbm [shape: f32[32,128], index: 17, kind: input, shape index: {}]   ;;  %s4642_s18 = inlined_call_operand.vmem [shape: f32[1,128], index: 18, kind: input, shape index: {}]   ;;  %s4643_s19 = inlined_call_operand.hbm [shape: f32[2,4,128], index: 19, kind: output, shape index: {}]  }
   0x1   :  { %4661 = sst [smem:[#allocation30_spill]] %s4624_s0 }
   0x2   :  { %4662 = sst [smem:[#allocation31_spill]] %s4625_s1 }
   0x3   :  { %4663 = sst [smem:[#allocation32_spill]] %s4626_s2 }
   0x4   :  { %4664 = sst [smem:[#allocation33_spill]] %s4627_s3 }
   0x5   :  { %4665 = sst [smem:[#allocation34_spill]] %s4630_s6 }
   0x6   :  { %4666 = sst [smem:[#allocation35_spill]] %s4631_s7 }
   0x7   :  { %4667 = sst [smem:[#allocation36_spill]] %s4640_s16 }
   0x8   :  { %4668 = sst [smem:[#allocation37_spill]] %s4642_s18 }
   0x9   :  { %4669 = sst [smem:[#allocation38_spill]] %s4643_s19 }
   0xa   :  { %24 = vsyncpa [#allocation3], 0 }
   0xb   :  { %25 = vsyncpa [#allocation6], 0 }
   0xc   :  { %26 = vsyncpa [#allocation9], 0 }
   0xd   :  { %27 = vsyncpa [#allocation12], 0 }
   0xe   :  { %28 = vsyncpa [#allocation15], 0 }
   0xf   :  { %29 = vsyncpa [#allocation4], 0 }
  0x10   :  { %31 = vsyncpa [#allocation4 + $0x1], 0  ;;  %s4062_s0 = smov 0   ;;  %s4064_s30 = smov 0  }
  0x11   :  { %s4066_s20 = smov 0   ;;  %s4068_s21 = smov 0  }
  0x12 LB: > { %4670 = sst [smem:[#allocation23_spill]] %s3931_s0  ;;  %s4083_s1 = sadd.s32 4294967295, %s3943_s21   ;;  %s3943_s21 = sphi %s4068_s21, %s4711_s21   ;;  %s3939_s20 = sphi %s4066_s20, %s4713_s20   ;;  %s3935_s30 = sphi %s4064_s30, %s4715_s30   ;;  %s3931_s0 = sphi %s4062_s0, %s4714_s0  }
  0x13   : > { %4671 = sst [smem:[#allocation24_spill]] %s3939_s20  ;;  %s2755_s22 = sadd.s32 4294967294, %s3943_s21  }
  0x14   : > { %4672 = sst [smem:[#allocation25_spill]] %s3943_s21  ;;  %s4087_s2 = sadd.s32 1, %s3943_s21  }
  0x15   : > { %4673 = sst [smem:[#allocation26_spill]] %s4087_s2  ;;  %s453_s23 = sadd.s32 1, %s3939_s20 }
  0x16   : > { %s450_s24 = ssub.s32 %s3943_s21, %s4087_s2  ;;  %p463_p0 = scmp.ne.s32.totalorder %s3939_s20, %s3935_s30 }
  0x17   : > { %p451_p1 = scmp.eq.s32.totalorder %s450_s24, 0  ;;  %p464_p2 = scmp.eq.s32.totalorder %s4083_s1, 1 }
  0x18   : > { %p469_p3 = scmp.ne.s32.totalorder %s3935_s30, %s3931_s0  ;;  %p470_p4 = scmp.eq.s32.totalorder %s2755_s22, 1 }
  0x19   : > { %s4098_s25 = scalar_select %p451_p1, %s3939_s20, %s453_s23  }
  0x1a   : > { %p4100_p5 = por %p464_p2, %p463_p0  ;;  %p4104_p6 = por %p470_p4, %p469_p3 }
  0x1b   : > { %4674 = sst [smem:[#allocation27_spill]] %s4098_s25  ;;  %p2756_p7 = scmp.ge.s32.totalorder %s3943_s21, 1 }
  0x1c   : > { %s4675_s3 = scalar_select %p4100_p5, 1, 0 }
  0x1d   : > { %s4677_s26 = scalar_select %p4104_p6, 1, 0 }
  0x1e   : > { %4676 = sst [smem:[#allocation28_spill]] %s4675_s3  ;;  %p477_p8 = scmp.lt.s32.totalorder %s3943_s21, 3 }
  0x1f   : > { %4678 = sst [smem:[#allocation29_spill]] %s4677_s26  ;;  %p4655_p9 = scmp.eq.s32.totalorder %s4083_s1, 0 }
  0x20   : > { %p4111_p10 = pnand %p2756_p7, %p477_p8  ;;  %s3945_s28 = smov [#allocation5]  }
  0x21   : > { %s501_s29 = sshll.u32 %s3945_s28, 4  ;;  %s3946_s22 = smov [#allocation8]   ;;  %s502_s29 = int_to_ptr.vmem [resolvable:$true] %s501_s29 }
  0x22   : > { %s4679_s27 = scalar_select %p4111_p10, 1, 0 }
  0x23   : > { %p3543_p11 = pneg %p4111_p10  ;;  %s528_s23 = sshll.u32 %s3946_s22, 4  ;;  %s4123_s23 = int_to_ptr.vmem [resolvable:$true] %s528_s23 }
  0x24   : > { %s3947_s25 = smov [#allocation11]   ;;  %s4681_s0 = sld [smem:[#allocation33_spill]] }
  0x25   : > { %p4119_p12 = pnand %p4655_p9, %p3543_p11  ;;  %s4125_s20 = sshll.u32 %s3947_s25, 4  ;;  %s557_s20 = int_to_ptr.vmem [resolvable:$true] %s4125_s20 }
  0x27   : > { %p4135_p0 = pneg %p4119_p12 }
  0x2a   : > { %s4682_s19 = smov %s4681_s0  ;;  %s3637_s28 = scalar_lea.hbm %s4681_s0, 128 }
  0x2b   : > { %p3638_p13 = scmp.ne.s32.totalorder %s4682_s19, %s3637_s28  ;;  %p3644_p3 = scmp.lt.u32.totalorder %s3637_s28, %s4682_s19 }
  0x2d   : > { %p3640_p1 = pnand %p4135_p0, %p3638_p13 }
  0x2f   : > { %p3641_p2 = pneg %p3640_p1 }
  0x31   : > { %p3646_p4 = pnand %p3644_p3, %p3641_p2 }
  0x33   : > { %3649 = shalt.err (!%p3646_p4)
}
  0x34   : > { %s3650_s0 = scalar_lea.vmem %s502_s29, 128  ;;  %p3658_p9 = scmp.lt.s32.totalorder %s502_s29, %s502_s29 }
  0x35   : > { %p3651_p7 = scmp.ne.s32.totalorder %s502_s29, %s3650_s0  ;;  %p3659_p6 = scmp.lt.s32.totalorder %s3650_s0, %s3650_s0 }
  0x37   : > { %p3653_p8 = pnand %p3651_p7, %p4135_p0  ;;  %p3660_p5 = por %p3659_p6, %p3658_p9 }
  0x39   : > { %p3654_p11 = pneg %p3653_p8 }
  0x3b   : > { %p3661_p10 = pnand %p3660_p5, %p3654_p11 }
  0x3d   : > { %3664 = shalt.err (!%p3661_p10)
}
  0x3e   : > { %3549 = dma.hbm_to_vmem [thread:$0]  (!%p4119_p12), %s4682_s19, 128, %s502_s29, [#allocation6]  }
  0x3f   : > { %s4684_s7 = sld [smem:[#allocation35_spill]] }
  0x45   : > { %s3665_s26 = scalar_lea.hbm %s4684_s7, 512 }
  0x46   : > { %p3666_p13 = scmp.ne.s32.totalorder %s4684_s7, %s3665_s26  ;;  %p3672_p5 = scmp.lt.u32.totalorder %s3665_s26, %s4684_s7 }
  0x48   : > { %p3668_p1 = pnand %p3666_p13, %p4135_p0 }
  0x4a   : > { %p3669_p6 = pneg %p3668_p1 }
  0x4c   : > { %p3674_p9 = pnand %p3672_p5, %p3669_p6 }
  0x4e   : > { %3677 = shalt.err (!%p3674_p9)
}
  0x4f   : > { %s3678_s29 = scalar_lea.vmem %s4123_s23, 512  ;;  %p3686_p4 = scmp.lt.s32.totalorder %s4123_s23, %s4123_s23 }
  0x50   : > { %p3679_p10 = scmp.ne.s32.totalorder %s4123_s23, %s3678_s29  ;;  %p3687_p7 = scmp.lt.s32.totalorder %s3678_s29, %s3678_s29 }
  0x52   : > { %p3681_p2 = pnand %p3679_p10, %p4135_p0  ;;  %p3688_p8 = por %p3687_p7, %p3686_p4 }
  0x54   : > { %p3682_p3 = pneg %p3681_p2 }
  0x56   : > { %p3689_p11 = pnand %p3688_p8, %p3682_p3 }
  0x58   : > { %3692 = shalt.err (!%p3689_p11)
}
  0x59   : > { %s4659_s18 = smov 128   ;;  %s4660_s16 = smov 8  }
  0x5a   : > { %3555 = dma.hbm_to_vmem [thread:$0]  (!%p4119_p12), %s4684_s7, 512, %s4123_s23, [#allocation9], %s4659_s18, %s4659_s18, %s4660_s16  }
  0x5b   : > { %s3693_s28 = scalar_lea.hbm %s4634_s10, 16 }
  0x5c   : > { %p3694_p13 = scmp.ne.s32.totalorder %s4634_s10, %s3693_s28  ;;  %p3700_p5 = scmp.lt.u32.totalorder %s3693_s28, %s4634_s10 }
  0x5e   : > { %p3696_p1 = pnand %p3694_p13, %p4135_p0 }
  0x60   : > { %p3697_p6 = pneg %p3696_p1 }
  0x62   : > { %p3702_p9 = pnand %p3700_p5, %p3697_p6 }
  0x64   : > { %3705 = shalt.err (!%p3702_p9)
}
  0x65   : > { %s3706_s21 = scalar_lea.vmem %s557_s20, 16  ;;  %s3713_s23 = scalar_lea.vmem %s557_s20, 32 }
  0x66   : > { %p3707_p10 = scmp.ne.s32.totalorder %s557_s20, %s3706_s21  ;;  %p3714_p4 = scmp.lt.s32.totalorder %s557_s20, %s557_s20 }
  0x67   : > { %p3715_p7 = scmp.lt.s32.totalorder %s3713_s23, %s3706_s21 }
  0x68   : > { %p3709_p2 = pnand %p3707_p10, %p4135_p0 }
  0x69   : > { %p3716_p8 = por %p3715_p7, %p3714_p4 }
  0x6a   : > { %p3710_p3 = pneg %p3709_p2 }
  0x6c   : > { %p3717_p11 = pnand %p3716_p8, %p3710_p3 }
  0x6e   : > { %3720 = shalt.err (!%p3717_p11)
}
  0x6f   : > { %3561 = dma.hbm_to_vmem [thread:$0]  (!%p4119_p12), %s4634_s10, 16, %s557_s20, [#allocation12]  }
  0x70   : > { %s3950_s19 = smov [#allocation2]   ;;  %s3951_s28 = smov [#allocation7]  }
  0x71   : > { %s490_s26 = sshll.u32 %s3950_s19, 4  ;;  %s518_s25 = sshll.u32 %s3951_s28, 4  ;;  %s491_s26 = int_to_ptr.vmem [resolvable:$true] %s490_s26  ;;  %s519_s25 = int_to_ptr.vmem [resolvable:$true] %s518_s25 }
  0x72   : > { %s4685_s18 = sld [smem:[#allocation32_spill]] }
  0x78   : > { %s3721_s16 = scalar_lea.hbm %s4685_s18, 64 }
  0x79   : > { %p3722_p13 = scmp.ne.s32.totalorder %s4685_s18, %s3721_s16  ;;  %p3728_p5 = scmp.lt.u32.totalorder %s3721_s16, %s4685_s18 }
  0x7b   : > { %p3724_p1 = pnand %p3722_p13, %p4135_p0 }
  0x7d   : > { %p3725_p6 = pneg %p3724_p1 }
  0x7f   : > { %p3730_p9 = pnand %p3728_p5, %p3725_p6 }
  0x81   : > { %3733 = shalt.err (!%p3730_p9)
}
  0x82   : > { %s3734_s20 = scalar_lea.vmem %s491_s26, 64  ;;  %p3742_p4 = scmp.lt.s32.totalorder %s491_s26, %s491_s26 }
  0x83   : > { %p3735_p10 = scmp.ne.s32.totalorder %s491_s26, %s3734_s20  ;;  %p3743_p7 = scmp.lt.s32.totalorder %s3734_s20, %s3734_s20 }
  0x85   : > { %p3737_p2 = pnand %p3735_p10, %p4135_p0  ;;  %p3744_p8 = por %p3743_p7, %p3742_p4 }
  0x87   : > { %p3738_p3 = pneg %p3737_p2 }
  0x89   : > { %p3745_p11 = pnand %p3744_p8, %p3738_p3 }
  0x8b   : > { %3748 = shalt.err (!%p3745_p11)
}
  0x8c   : > { %3546 = dma.hbm_to_vmem [thread:$0]  (!%p4119_p12), %s4685_s18, 64, %s491_s26, [#allocation3]  }
  0x8d   : > { %s4686_s6 = sld [smem:[#allocation34_spill]] }
  0x93   : > { %s3749_s28 = scalar_lea.hbm %s4686_s6, 16 }
  0x94   : > { %p3750_p13 = scmp.ne.s32.totalorder %s4686_s6, %s3749_s28  ;;  %p3756_p5 = scmp.lt.u32.totalorder %s3749_s28, %s4686_s6 }
  0x96   : > { %p3752_p1 = pnand %p3750_p13, %p4135_p0 }
  0x98   : > { %p3753_p6 = pneg %p3752_p1 }
  0x9a   : > { %p3758_p9 = pnand %p3756_p5, %p3753_p6 }
  0x9c   : > { %3761 = shalt.err (!%p3758_p9)
}
  0x9d   : > { %s3762_s2 = scalar_lea.vmem %s519_s25, 16  ;;  %s3769_s26 = scalar_lea.vmem %s519_s25, 32 }
  0x9e   : > { %p3763_p10 = scmp.ne.s32.totalorder %s519_s25, %s3762_s2  ;;  %p3770_p4 = scmp.lt.s32.totalorder %s519_s25, %s519_s25 }
  0x9f   : > { %p3771_p7 = scmp.lt.s32.totalorder %s3769_s26, %s3762_s2 }
  0xa0   : > { %p3765_p2 = pnand %p3763_p10, %p4135_p0 }
  0xa1   : > { %p3772_p8 = por %p3771_p7, %p3770_p4 }
  0xa2   : > { %p3766_p3 = pneg %p3765_p2 }
  0xa4   : > { %p3773_p11 = pnand %p3772_p8, %p3766_p3 }
  0xa6   : > { %3776 = shalt.err (!%p3773_p11)
}
  0xa7   : > { %3552 = dma.hbm_to_vmem [thread:$0]  (!%p4119_p12), %s4686_s6, 16, %s519_s25, [#allocation6]  }
  0xa8   : > { %s3952_s19 = smov [#allocation10]   ;;  %s3953_s16 = smov [#allocation13]  }
  0xa9   : > { %s542_s7 = sshll.u32 %s3952_s19, 4  ;;  %s569_s28 = sshll.u32 %s3953_s16, 4  ;;  %s543_s7 = int_to_ptr.vmem [resolvable:$true] %s542_s7  ;;  %s570_s28 = int_to_ptr.vmem [resolvable:$true] %s569_s28 }
  0xaa   : > { %s3777_s21 = scalar_lea.hbm %s4632_s8, 16 }
  0xab   : > { %p3778_p13 = scmp.ne.s32.totalorder %s4632_s8, %s3777_s21  ;;  %p3784_p5 = scmp.lt.u32.totalorder %s3777_s21, %s4632_s8 }
  0xad   : > { %p3780_p1 = pnand %p3778_p13, %p4135_p0 }
  0xaf   : > { %p3781_p6 = pneg %p3780_p1 }
  0xb1   : > { %p3786_p9 = pnand %p3784_p5, %p3781_p6 }
  0xb3   : > { %3789 = shalt.err (!%p3786_p9)
}
  0xb4   : > { %s3790_s25 = scalar_lea.vmem %s543_s7, 16  ;;  %s3797_s3 = scalar_lea.vmem %s543_s7, 32 }
  0xb5   : > { %p3791_p10 = scmp.ne.s32.totalorder %s543_s7, %s3790_s25  ;;  %p3798_p4 = scmp.lt.s32.totalorder %s543_s7, %s543_s7 }
  0xb6   : > { %p3799_p7 = scmp.lt.s32.totalorder %s3797_s3, %s3790_s25 }
  0xb7   : > { %p3793_p2 = pnand %p3791_p10, %p4135_p0 }
  0xb8   : > { %p3800_p8 = por %p3799_p7, %p3798_p4 }
  0xb9   : > { %p3794_p3 = pneg %p3793_p2 }
  0xbb   : > { %p3801_p11 = pnand %p3800_p8, %p3794_p3 }
  0xbd   : > { %3804 = shalt.err (!%p3801_p11)
}
  0xbe   : > { %3558 = dma.hbm_to_vmem [thread:$0]  (!%p4119_p12), %s4632_s8, 16, %s543_s7, [#allocation9]  }
  0xbf   : > { %s3805_s21 = scalar_lea.hbm %s4636_s12, 32 }
  0xc0   : > { %p3806_p13 = scmp.ne.s32.totalorder %s4636_s12, %s3805_s21  ;;  %p3812_p5 = scmp.lt.u32.totalorder %s3805_s21, %s4636_s12 }
  0xc2   : > { %p3808_p1 = pnand %p3806_p13, %p4135_p0 }
  0xc4   : > { %p3809_p6 = pneg %p3808_p1 }
  0xc6   : > { %p3814_p9 = pnand %p3812_p5, %p3809_p6 }
  0xc8   : > { %3817 = shalt.err (!%p3814_p9)
}
  0xc9   : > { %s3818_s25 = scalar_lea.vmem %s570_s28, 32  ;;  %p3826_p4 = scmp.lt.s32.totalorder %s570_s28, %s570_s28 }
  0xca   : > { %p3819_p10 = scmp.ne.s32.totalorder %s570_s28, %s3818_s25  ;;  %p3827_p7 = scmp.lt.s32.totalorder %s3818_s25, %s3818_s25 }
  0xcc   : > { %p3821_p2 = pnand %p3819_p10, %p4135_p0  ;;  %p3828_p8 = por %p3827_p7, %p3826_p4 }
  0xce   : > { %p3822_p3 = pneg %p3821_p2 }
  0xd0   : > { %p3829_p11 = pnand %p3828_p8, %p3822_p3 }
  0xd2   : > { %3832 = shalt.err (!%p3829_p11)
}
  0xd3   : > { %s3954_s7 = smov 16   ;;  %s3955_s3 = smov 1  }
  0xd4   : > { %3564 = dma.hbm_to_vmem [thread:$0]  (!%p4119_p12), %s4636_s12, 32, %s570_s28, [#allocation12], %s3954_s7, %s3954_s7, %s3955_s3  }
  0xd5   : > { %s3956_s0 = smov [#allocation14]   ;;  %s3833_s2 = scalar_lea.hbm %s4641_s17, 512 }
  0xd6   : > { %s594_s29 = sshll.u32 %s3956_s0, 4  ;;  %p3834_p13 = scmp.ne.s32.totalorder %s4641_s17, %s3833_s2  ;;  %s595_s29 = int_to_ptr.vmem [resolvable:$true] %s594_s29 }
  0xd7   : > { %p3840_p5 = scmp.lt.u32.totalorder %s3833_s2, %s4641_s17 }
  0xd8   : > { %p3836_p1 = pnand %p3834_p13, %p4135_p0 }
  0xda   : > { %p3837_p6 = pneg %p3836_p1 }
  0xdc   : > { %p3842_p9 = pnand %p3840_p5, %p3837_p6 }
  0xde   : > { %3845 = shalt.err (!%p3842_p9)
}
  0xdf   : > { %s3846_s28 = scalar_lea.vmem %s595_s29, 512  ;;  %p3854_p4 = scmp.lt.s32.totalorder %s595_s29, %s595_s29 }
  0xe0   : > { %p3847_p10 = scmp.ne.s32.totalorder %s595_s29, %s3846_s28  ;;  %p3855_p7 = scmp.lt.s32.totalorder %s3846_s28, %s3846_s28 }
  0xe2   : > { %p3849_p2 = pnand %p3847_p10, %p4135_p0  ;;  %p3856_p8 = por %p3855_p7, %p3854_p4 }
  0xe4   : > { %p3850_p3 = pneg %p3849_p2 }
  0xe6   : > { %p3857_p11 = pnand %p3856_p8, %p3850_p3 }
  0xe8   : > { %3860 = shalt.err (!%p3857_p11)
}
  0xe9   : > { %s4687_s7 = smov 8   ;;  %s4688_s3 = smov 128  }
  0xea   : > { %3567 = dma.hbm_to_vmem [thread:$0]  (!%p4119_p12), %s4641_s17, 512, %s595_s29, [#allocation15], %s4688_s3, %s4688_s3, %s4687_s7  }
  0xeb   : > { %p4689_p13 = scmp.ne.s32.totalorder %s4679_s27, 0 }
  0xec   : > { %p4690_p0 = scmp.eq.s32.totalorder (!%p4689_p13), %s4083_s1, 0 }
  0xed   : > { %630 = sbr.rel (%p4689_p13) target bundleno = 2928 (0xb70), region = 96 }
  0xf4   : > { %3906 = dma.done.wait (%p4690_p0), [#allocation3], 64   ;;  %p4691_p1 = pmov %p4690_p0 }
  0xf5   : > { %p4692_p6 = pmov %p4690_p0 }
  0xf6   : > { %3908 = vsyncadd (%p4691_p1), [#allocation3], 4294967232 }
  0xf7   : > { %3910 = dma.done.wait (%p4692_p6), [#allocation6], 144   ;;  %p4693_p5 = pmov %p4690_p0 }
  0xf8   : > { %p4694_p9 = pmov %p4690_p0 }
  0xf9   : > { %3912 = vsyncadd (%p4693_p5), [#allocation6], 4294967152 }
  0xfa   : > { %3914 = dma.done.wait (%p4694_p9), [#allocation9], 528   ;;  %p4695_p12 = pmov %p4690_p0 }
  0xfb   : > { %p4696_p10 = pmov %p4690_p0 }
  0xfc   : > { %3916 = vsyncadd (%p4695_p12), [#allocation9], 4294966768 }
  0xfd   : > { %3918 = dma.done.wait (%p4696_p10), [#allocation12], 48   ;;  %p4697_p2 = pmov %p4690_p0 }
  0xfe   : > { %p4698_p3 = pmov %p4690_p0 }
  0xff   : > { %3920 = vsyncadd (%p4697_p2), [#allocation12], 4294967248 }
 0x100   : > { %3922 = dma.done.wait (%p4698_p3), [#allocation15], 512   ;;  %p4699_p4 = pmov %p4690_p0 }
 0x101   : > { %s2776_s27 = sshll.u32 %s4083_s1, 4  ;;  %vm770_vm0 = vcmask 64512   ;;  %s4700_s0 = sld [smem:[#allocation30_spill]]  ;;  %v762_v0 = vld [vmem:[#allocation5] sm:$0xff]  ;;  %v982_v20 = vld [vmem:[%s4629_s5 + $0x10] sm:$0xff]  ;;  %v983_v21 = vld [vmem:[%s4629_s5 + $0x18] sm:$0xff] }
 0x102   : > { %3924 = vsyncadd (%p4699_p4), [#allocation15], 4294966784  ;;  %p720_p7 = scmp.lt.s32.totalorder %s2776_s27, 31  ;;  %3094 = vmatprep.subr.mxu0 %v762_v0  ;;  %v980_v6 = vld [vmem:[%s4629_s5] sm:$0xff]  ;;  %v981_v7 = vld [vmem:[%s4629_s5 + $0x8] sm:$0xff]  ;;  %v3393_v22 = vpack.c.bf16 %v983_v21, %v982_v20  ;;  %vm991_vm1 = vcmask 261120  }
 0x103   : > { %3095 = vmatpush3.msra.mxu0 %v762_v0  ;;  %v3389_v8 = vpack.c.bf16 %v981_v7, %v980_v6  ;;  %v1185_v23 = vld [vmem:[#allocation8] sm:$0xff]  ;;  %v1186_v24 = vld [vmem:[#allocation8 + $0x8] sm:$0xff]  ;;  %v1187_v25 = vld [vmem:[#allocation8 + $0x10] sm:$0xff]  ;;  %vm1420_vm2 = vcmask 523264   ;;  %p725_p8 = scmp.lt.s32.totalorder %s4083_s1, 1  ;;  %s4701_s22 = sld [smem:[#allocation31_spill]] }
 0x104   : > { %s4717_s27 = smov (!%p720_p7, %s2776_s27), 31  ;;  %v3397_v26 = vpack.c.bf16 %v1186_v24, %v1185_v23  ;;  %v1188_v27 = vld [vmem:[#allocation8 + $0x18] sm:$0xff]  ;;  %v2780_v29 = vld [vmem:[%s4628_s4] ss:$0 sm:$0xff]  ;;  %v1411_v23 = vld [vmem:[%s4633_s9 + $0x30] sm:$0xff]  ;;  %s3957_s28 = smov 96  }
 0x105   : > { %s2777_s24 = sshll.u32 %s4717_s27, 3  ;;  %3390 = vmatprep.subr.bf16.mxu1 %v3389_v8  ;;  %v3401_v28 = vpack.c.bf16 %v1188_v27, %v1187_v25  ;;  %v1409_v20 = vld [vmem:[%s4633_s9 + $0x20] sm:$0xff]  ;;  %v1410_v21 = vld [vmem:[%s4633_s9 + $0x28] sm:$0xff]  ;;  %v1412_v24 = vld [vmem:[%s4633_s9 + $0x38] sm:$0xff]  ;;  %vm3959_vm3 = vmmov 0   ;;  %s4702_s27 = sld [smem:[#allocation36_spill]] }
 0x106   : > { %3392 = vmatpush3.bf16.msra.mxu1 %v3389_v8  ;;  %3398 = vmatprep.subr.bf16.mxu0 %v3397_v26  ;;  %v3417_v25 = vpack.c.bf16 %v1412_v24, %v1411_v23  ;;  %s726_s6 = scalar_select %p725_p8, %s4083_s1, 1 }
 0x107   : > { %s4315_s29 = scalar_lea.vmem %s4700_s0, %s2777_s24  ;;  %3394 = vmatprep.subr.bf16.mxu1 %v3393_v22  ;;  %s4703_s24 = sld [smem:[#allocation28_spill]] }
 0x108   : > { %v730_v1 = vld [vmem:[%s4315_s29] sm:$0xff]  ;;  %v731_v2 = vld [vmem:[%s4315_s29 + $0x8] sm:$0xff]  ;;  %v732_v3 = vld [vmem:[%s4315_s29 + $0x10] sm:$0xff]  ;;  %s2902_s19 = sshll.u32 %s726_s6, 5  ;;  %s4704_s21 = sld [smem:[#allocation37_spill]] }
 0x109   : > { %3096 = vmatprep.mubr.msk.f32.mxu0 %vm770_vm0, %v730_v1  ;;  %v733_v4 = vld [vmem:[%s4315_s29 + $0x18] sm:$0xff]  ;;  %v734_v5 = vld [vmem:[%s4315_s29 + $0x20] sm:$0xff]  ;;  %v735_v9 = vld [vmem:[%s4315_s29 + $0x28] sm:$0xff]  ;;  %s4441_s16 = scalar_lea.vmem %s4701_s22, %s2902_s19  ;;  %s716_s22 = sand.u32 1, %s3935_s30  }
 0x10a   : > { %3097 = vmatmul.mubr.msk.f32.vlgmr.msra.gmra.mrb[0].mxu0 %vm770_vm0, %v731_v2  ;;  %v736_v10 = vld [vmem:[%s4315_s29 + $0x30] sm:$0xff]  ;;  %v737_v11 = vld [vmem:[%s4315_s29 + $0x38] sm:$0xff]  ;;  %v738_v12 = vld [vmem:[%s4315_s29 + $0x40] sm:$0xff]  ;;  %3396 = vmatpush3.bf16.msra.mxu1 %v3393_v22  ;;  %v3413_v22 = vpack.c.bf16 %v1410_v21, %v1409_v20  ;;  %s2899_s23 = sshll.u32 %s4083_s1, 6  ;;  %s2592_s3 = scalar_lea.sflag [#allocation4], %s716_s22 }
 0x10b   : > { %3099 = vmatprep.mubr.msk.f32.mxu0 %vm770_vm0, %v732_v3  ;;  %v739_v13 = vld [vmem:[%s4315_s29 + $0x48] sm:$0xff]  ;;  %v740_v14 = vld [vmem:[%s4315_s29 + $0x50] sm:$0xff]  ;;  %v741_v15 = vld [vmem:[%s4315_s29 + $0x58] sm:$0xff]  ;;  %3400 = vmatpush3.bf16.msra.mxu0 %v3397_v26  ;;  %s3961_s1 = smov [#allocation16]  }
 0x10c   : > { %v742_v16 = vld [vmem:[%s4315_s29 + $0x60] sm:$0xff]  ;;  %v743_v17 = vld [vmem:[%s4315_s29 + $0x68] sm:$0xff]  ;;  %v744_v18 = vld [vmem:[%s4315_s29 + $0x70] sm:$0xff]  ;;  %3402 = vmatprep.subr.bf16.mxu0 %v3401_v28  ;;  %s3865_s19 = sshll.u32 %s3961_s1, 4  ;;  %s3866_s19 = int_to_ptr.vmem [resolvable:$false] %s3865_s19 }
 0x10d   : > { %v745_v19 = vld [vmem:[%s4315_s29 + $0x78] sm:$0xff]  ;;  %v2797_v26 = vld [vmem:[#allocation7] ss:$0 sm:$0xff]  ;;  %p4706_p13 = scmp.ne.s32.totalorder %s4703_s24, 0 }
 0x10e   : > { %3100 = vmatmul.mubr.msk.f32.gmra.mrb[2].mxu0 %vm770_vm0, %v733_v4 }
 0x10f   : > { %3102 = vmatprep.mubr.msk.f32.mxu0 %vm770_vm0, %v734_v5  ;;  %3404 = vmatpush3.bf16.msra.mxu0 %v3401_v28 }
 0x112   : > { %3103 = vmatmul.mubr.msk.f32.gmra.mrb[4].mxu0 %vm770_vm0, %v735_v9 }
 0x113   : > { %3105 = vmatprep.mubr.msk.f32.mxu0 %vm770_vm0, %v736_v10 }
 0x116   : > { %3106 = vmatmul.mubr.msk.f32.gmra.mrb[6].mxu0 %vm770_vm0, %v737_v11 }
 0x117   : > { %3108 = vmatprep.mubr.msk.f32.mxu0 %vm770_vm0, %v738_v12 }
 0x11a   : > { %3109 = vmatmul.mubr.msk.f32.gmra.mrb[8].mxu0 %vm770_vm0, %v739_v13 }
 0x11b   : > { %3111 = vmatprep.mubr.msk.f32.mxu0 %vm770_vm0, %v740_v14  ;;  %v1405_v14 = vld [vmem:[%s4633_s9] sm:$0xff] }
 0x11e   : > { %3112 = vmatmul.mubr.msk.f32.gmra.mrb[10].mxu0 %vm770_vm0, %v741_v15  ;;  %v1406_v15 = vld [vmem:[%s4633_s9 + $0x8] sm:$0xff] }
 0x11f   : > { %3114 = vmatprep.mubr.msk.f32.mxu0 %vm770_vm0, %v742_v16  ;;  %v1407_v16 = vld [vmem:[%s4633_s9 + $0x10] sm:$0xff] }
 0x122   : > { %3115 = vmatmul.mubr.msk.f32.gmra.mrb[12].mxu0 %vm770_vm0, %v743_v17  ;;  %v3405_v17 = vpack.c.bf16 %v1406_v15, %v1405_v14 }
 0x123   : > { %3117 = vmatprep.mubr.msk.f32.mxu0 %vm770_vm0, %v744_v18  ;;  %v1408_v18 = vld [vmem:[%s4633_s9 + $0x18] sm:$0xff] }
 0x124   : > { %3406 = vmatprep.subr.bf16.mxu1 %v3405_v17 }
 0x126   : > { %3118 = vmatmul.mubr.msk.f32.gmra.mrb[14].mxu0 %vm770_vm0, %v745_v19  ;;  %v3409_v19 = vpack.c.bf16 %v1408_v18, %v1407_v16 }
 0x1dd   : > { %v3098_v30 = vpop.f32.mrb[0].mxu0 }
 0x1de   : > { %v891_v31 = vadd.f32 %v3098_v30, %v2780_v29  ;;  %v885_v32 = vpop.f32.mrb[1].mxu0 }
 0x1df   : > { %v886_v33 = vadd.f32 %v2780_v29, %v885_v32 }
 0x1e0   : > { %v965_v36 = vmax.f32 %v891_v31, 0.0 }
 0x1e1   : > { %v964_v34 = vmax.f32 %v886_v33, 0.0  ;;  %v3101_v35 = vpop.f32.mrb[2].mxu0 }
 0x1e2   : > { %v901_v37 = vadd.f32 %v3101_v35, %v2780_v29  ;;  %v895_v38 = vpop.f32.mrb[3].mxu0 }
 0x1e3   : > { %v896_v39 = vadd.f32 %v2780_v29, %v895_v38  ;;  %3128 = vmatprep.mubr.msk.f32.mxu1 %vm991_vm1, %v964_v34 }
 0x1e4   : > { %3129 = vmatmul.mubr.msk.f32.vlgmr.msra.gmra.mrb[0].mxu1 %vm991_vm1, %v965_v36  ;;  %v967_v42 = vmax.f32 %v901_v37, 0.0 }
 0x1e5   : > { %v966_v40 = vmax.f32 %v896_v39, 0.0  ;;  %v3104_v41 = vpop.f32.mrb[4].mxu0  ;;  %3408 = vmatpush3.bf16.msra.mxu1 %v3405_v17 }
 0x1e6   : > { %v911_v43 = vadd.f32 %v3104_v41, %v2780_v29  ;;  %v905_v44 = vpop.f32.mrb[5].mxu0  ;;  %3410 = vmatprep.subr.bf16.mxu1 %v3409_v19 }
 0x1e7   : > { %v906_v45 = vadd.f32 %v2780_v29, %v905_v44  ;;  %3131 = vmatprep.mubr.msk.f32.mxu1 %vm991_vm1, %v966_v40 }
 0x1e8   : > { %3132 = vmatmul.mubr.msk.f32.gmra.mrb[2].mxu1 %vm991_vm1, %v967_v42  ;;  %v969_v48 = vmax.f32 %v911_v43, 0.0 }
 0x1e9   : > { %v968_v46 = vmax.f32 %v906_v45, 0.0  ;;  %v3107_v47 = vpop.f32.mrb[6].mxu0  ;;  %3412 = vmatpush3.bf16.msra.mxu1 %v3409_v19 }
 0x1ea   : > { %v921_v49 = vadd.f32 %v3107_v47, %v2780_v29  ;;  %v915_v50 = vpop.f32.mrb[7].mxu0  ;;  %3414 = vmatprep.subr.bf16.mxu1 %v3413_v22 }
 0x1eb   : > { %v916_v51 = vadd.f32 %v2780_v29, %v915_v50  ;;  %3134 = vmatprep.mubr.msk.f32.mxu1 %vm991_vm1, %v968_v46 }
 0x1ec   : > { %3135 = vmatmul.mubr.msk.f32.gmra.mrb[4].mxu1 %vm991_vm1, %v969_v48  ;;  %v971_v54 = vmax.f32 %v921_v49, 0.0 }
 0x1ed   : > { %v970_v52 = vmax.f32 %v916_v51, 0.0  ;;  %v3110_v53 = vpop.f32.mrb[8].mxu0  ;;  %3416 = vmatpush3.bf16.msra.mxu1 %v3413_v22 }
 0x1ee   : > { %v931_v55 = vadd.f32 %v3110_v53, %v2780_v29  ;;  %v925_v56 = vpop.f32.mrb[9].mxu0  ;;  %3418 = vmatprep.subr.bf16.mxu1 %v3417_v25 }
 0x1ef   : > { %v926_v57 = vadd.f32 %v2780_v29, %v925_v56  ;;  %3137 = vmatprep.mubr.msk.f32.mxu1 %vm991_vm1, %v970_v52 }
 0x1f0   : > { %3138 = vmatmul.mubr.msk.f32.gmra.mrb[6].mxu1 %vm991_vm1, %v971_v54  ;;  %v973_v60 = vmax.f32 %v931_v55, 0.0 }
 0x1f1   : > { %v972_v58 = vmax.f32 %v926_v57, 0.0  ;;  %v3113_v59 = vpop.f32.mrb[10].mxu0  ;;  %3420 = vmatpush3.bf16.msra.mxu1 %v3417_v25 }
 0x1f2   : > { %v941_v61 = vadd.f32 %v3113_v59, %v2780_v29  ;;  %v935_v62 = vpop.f32.mrb[11].mxu0  ;;  %v2814_v59 = vld [vmem:[#allocation10] ss:$0 sm:$0xff] }
 0x1f3   : > { %v936_v63 = vadd.f32 %v2780_v29, %v935_v62  ;;  %3140 = vmatprep.mubr.msk.f32.mxu1 %vm991_vm1, %v972_v58 }
 0x1f4   : > { %3141 = vmatmul.mubr.msk.f32.gmra.mrb[8].mxu1 %vm991_vm1, %v973_v60  ;;  %v975_v2 = vmax.f32 %v941_v61, 0.0 }
 0x1f5   : > { %v974_v0 = vmax.f32 %v936_v63, 0.0  ;;  %v3116_v1 = vpop.f32.mrb[12].mxu0 }
 0x1f6   : > { %v951_v3 = vadd.f32 %v3116_v1, %v2780_v29  ;;  %v945_v4 = vpop.f32.mrb[13].mxu0 }
 0x1f7   : > { %v946_v5 = vadd.f32 %v2780_v29, %v945_v4  ;;  %3143 = vmatprep.mubr.msk.f32.mxu1 %vm991_vm1, %v974_v0 }
 0x1f8   : > { %3144 = vmatmul.mubr.msk.f32.gmra.mrb[10].mxu1 %vm991_vm1, %v975_v2  ;;  %v977_v8 = vmax.f32 %v951_v3, 0.0 }
 0x1f9   : > { %v976_v6 = vmax.f32 %v946_v5, 0.0  ;;  %v3119_v7 = vpop.f32.mrb[14].mxu0 }
 0x1fa   : > { %v961_v9 = vadd.f32 %v3119_v7, %v2780_v29  ;;  %v955_v10 = vpop.f32.mrb[15].mxu0 }
 0x1fb   : > { %v956_v11 = vadd.f32 %v2780_v29, %v955_v10  ;;  %3146 = vmatprep.mubr.msk.f32.mxu1 %vm991_vm1, %v976_v6 }
 0x1fc   : > { %3147 = vmatmul.mubr.msk.f32.gmra.mrb[12].mxu1 %vm991_vm1, %v977_v8  ;;  %v979_v13 = vmax.f32 %v961_v9, 0.0 }
 0x1fd   : > { %v978_v12 = vmax.f32 %v956_v11, 0.0 }
 0x1ff   : > { %3149 = vmatprep.mubr.msk.f32.mxu1 %vm991_vm1, %v978_v12 }
 0x200   : > { %3150 = vmatmul.mubr.msk.f32.gmra.mrb[14].mxu1 %vm991_vm1, %v979_v13 }
 0x2b7   : > { %v3130_v27 = vpop.f32.mrb[0].mxu1 }
 0x2b8   : > { %v1106_v28 = vpop.f32.mrb[1].mxu1  ;;  %v1112_v30 = vadd.f32 %v3130_v27, %v2797_v26 }
 0x2b9   : > { %v1107_v29 = vadd.f32 %v2797_v26, %v1106_v28 }
 0x2bb   : > { %v3133_v31 = vpop.f32.mrb[2].mxu1  ;;  %3160 = vmatprep.mubr.msk.f32.mxu0 %vm991_vm1, %v1107_v29 }
 0x2bc   : > { %v1116_v32 = vpop.f32.mrb[3].mxu1  ;;  %3161 = vmatmul.mubr.msk.f32.vlgmr.msra.gmra.mrb[16].mxu0 %vm991_vm1, %v1112_v30  ;;  %v1122_v34 = vadd.f32 %v3133_v31, %v2797_v26 }
 0x2bd   : > { %v1117_v33 = vadd.f32 %v2797_v26, %v1116_v32 }
 0x2bf   : > { %v3136_v35 = vpop.f32.mrb[4].mxu1  ;;  %3163 = vmatprep.mubr.msk.f32.mxu0 %vm991_vm1, %v1117_v33 }
 0x2c0   : > { %v1126_v36 = vpop.f32.mrb[5].mxu1  ;;  %3164 = vmatmul.mubr.msk.f32.gmra.mrb[18].mxu0 %vm991_vm1, %v1122_v34  ;;  %v1132_v38 = vadd.f32 %v3136_v35, %v2797_v26 }
 0x2c1   : > { %v1127_v37 = vadd.f32 %v2797_v26, %v1126_v36 }
 0x2c3   : > { %v3139_v39 = vpop.f32.mrb[6].mxu1  ;;  %3166 = vmatprep.mubr.msk.f32.mxu0 %vm991_vm1, %v1127_v37 }
 0x2c4   : > { %v1136_v40 = vpop.f32.mrb[7].mxu1  ;;  %3167 = vmatmul.mubr.msk.f32.gmra.mrb[20].mxu0 %vm991_vm1, %v1132_v38  ;;  %v1142_v42 = vadd.f32 %v3139_v39, %v2797_v26 }
 0x2c5   : > { %v1137_v41 = vadd.f32 %v2797_v26, %v1136_v40 }
 0x2c7   : > { %v3142_v43 = vpop.f32.mrb[8].mxu1  ;;  %3169 = vmatprep.mubr.msk.f32.mxu0 %vm991_vm1, %v1137_v41 }
 0x2c8   : > { %v1146_v44 = vpop.f32.mrb[9].mxu1  ;;  %3170 = vmatmul.mubr.msk.f32.gmra.mrb[22].mxu0 %vm991_vm1, %v1142_v42  ;;  %v1152_v46 = vadd.f32 %v3142_v43, %v2797_v26 }
 0x2c9   : > { %v1147_v45 = vadd.f32 %v2797_v26, %v1146_v44  ;;  %v4444_v44 = vld [vmem:[%s4441_s16] sm:$0xff]  }
 0x2cb   : > { %v3145_v47 = vpop.f32.mrb[10].mxu1  ;;  %3172 = vmatprep.mubr.msk.f32.mxu0 %vm991_vm1, %v1147_v45  ;;  %v2905_v45 = vunpack.c.l.bf16 %v4444_v44 }
 0x2cc   : > { %v1156_v48 = vpop.f32.mrb[11].mxu1  ;;  %3173 = vmatmul.mubr.msk.f32.gmra.mrb[24].mxu0 %vm991_vm1, %v1152_v46  ;;  %v1162_v50 = vadd.f32 %v3145_v47, %v2797_v26  ;;  %v1719_v46 = vld [vmem:[%s4635_s11] sm:$0xff]  ;;  %v1720_v47 = vld [vmem:[%s4635_s11 + $0x8] sm:$0xff] }
 0x2cd   : > { %v1157_v49 = vadd.f32 %v2797_v26, %v1156_v48  ;;  %v1721_v48 = vld [vmem:[%s4635_s11 + $0x10] sm:$0xff] }
 0x2cf   : > { %v3148_v51 = vpop.f32.mrb[12].mxu1  ;;  %3175 = vmatprep.mubr.msk.f32.mxu0 %vm991_vm1, %v1157_v49  ;;  %v3453_v49 = vpack.c.bf16 %v1720_v47, %v1719_v46  ;;  %v1870_v47 = vld [vmem:[%s4637_s13 + $0x18] sm:$0xff] }
 0x2d0   : > { %v1166_v52 = vpop.f32.mrb[13].mxu1  ;;  %3176 = vmatmul.mubr.msk.f32.gmra.mrb[26].mxu0 %vm991_vm1, %v1162_v50  ;;  %v1172_v54 = vadd.f32 %v3148_v51, %v2797_v26  ;;  %v1722_v50 = vld [vmem:[%s4635_s11 + $0x18] sm:$0xff] }
 0x2d1   : > { %v1167_v53 = vadd.f32 %v2797_v26, %v1166_v52  ;;  %v3457_v51 = vpack.c.bf16 %v1722_v50, %v1721_v48  ;;  %3454 = vmatprep.subr.bf16.mxu1 %v3453_v49  ;;  %v2831_v52 = vld [vmem:[#allocation11] ss:$0 sm:$0xff] }
 0x2d3   : > { %v3151_v55 = vpop.f32.mrb[14].mxu1  ;;  %3178 = vmatprep.mubr.msk.f32.mxu0 %vm991_vm1, %v1167_v53 }
 0x2d4   : > { %v1176_v56 = vpop.f32.mrb[15].mxu1  ;;  %3179 = vmatmul.mubr.msk.f32.gmra.mrb[28].mxu0 %vm991_vm1, %v1172_v54  ;;  %v1182_v58 = vadd.f32 %v3151_v55, %v2797_v26 }
 0x2d5   : > { %v1177_v57 = vadd.f32 %v2797_v26, %v1176_v56 }
 0x2d7   : > { %3181 = vmatprep.mubr.msk.f32.mxu0 %vm991_vm1, %v1177_v57 }
 0x2d8   : > { %3182 = vmatmul.mubr.msk.f32.gmra.mrb[30].mxu0 %vm991_vm1, %v1182_v58 }
 0x2d9   : > { %3256 = vmatprep.mubr.f32.mxu0 %v2905_v45 }
 0x38f   : > { %v3162_v60 = vpop.f32.mrb[16].mxu0 }
 0x390   : > { %v1316_v61 = vadd.f32 %v3162_v60, %v2814_v59  ;;  %v1310_v62 = vpop.f32.mrb[17].mxu0 }
 0x391   : > { %v1311_v63 = vadd.f32 %v2814_v59, %v1310_v62 }
 0x392   : > { %v1390_v2 = vmax.f32 %v1316_v61, 0.0 }
 0x393   : > { %v1389_v0 = vmax.f32 %v1311_v63, 0.0  ;;  %v3165_v1 = vpop.f32.mrb[18].mxu0 }
 0x394   : > { %v1326_v3 = vadd.f32 %v3165_v1, %v2814_v59  ;;  %v1320_v4 = vpop.f32.mrb[19].mxu0 }
 0x395   : > { %v1321_v5 = vadd.f32 %v2814_v59, %v1320_v4  ;;  %3200 = vmatprep.mubr.msk.f32.mxu1 %vm1420_vm2, %v1389_v0 }
 0x396   : > { %3201 = vmatmul.mubr.msk.f32.vlgmr.msra.gmra.mrb[16].mxu1 %vm1420_vm2, %v1390_v2  ;;  %v1392_v8 = vmax.f32 %v1326_v3, 0.0 }
 0x397   : > { %v1391_v6 = vmax.f32 %v1321_v5, 0.0  ;;  %v3168_v7 = vpop.f32.mrb[20].mxu0  ;;  %3456 = vmatpush3.bf16.msra.mxu1 %v3453_v49 }
 0x398   : > { %v1336_v9 = vadd.f32 %v3168_v7, %v2814_v59  ;;  %v1330_v10 = vpop.f32.mrb[21].mxu0  ;;  %3458 = vmatprep.subr.bf16.mxu1 %v3457_v51 }
 0x399   : > { %v1331_v11 = vadd.f32 %v2814_v59, %v1330_v10  ;;  %3203 = vmatprep.mubr.msk.f32.mxu1 %vm1420_vm2, %v1391_v6 }
 0x39a   : > { %3204 = vmatmul.mubr.msk.f32.gmra.mrb[18].mxu1 %vm1420_vm2, %v1392_v8  ;;  %v1394_v14 = vmax.f32 %v1336_v9, 0.0 }
 0x39b   : > { %v1393_v12 = vmax.f32 %v1331_v11, 0.0  ;;  %v3171_v13 = vpop.f32.mrb[22].mxu0  ;;  %3460 = vmatpush3.bf16.msra.mxu1 %v3457_v51 }
 0x39c   : > { %v1346_v15 = vadd.f32 %v3171_v13, %v2814_v59  ;;  %v1340_v16 = vpop.f32.mrb[23].mxu0 }
 0x39d   : > { %v1341_v17 = vadd.f32 %v2814_v59, %v1340_v16  ;;  %3206 = vmatprep.mubr.msk.f32.mxu1 %vm1420_vm2, %v1393_v12 }
 0x39e   : > { %3207 = vmatmul.mubr.msk.f32.gmra.mrb[20].mxu1 %vm1420_vm2, %v1394_v14  ;;  %v1396_v20 = vmax.f32 %v1346_v15, 0.0 }
 0x39f   : > { %v1395_v18 = vmax.f32 %v1341_v17, 0.0  ;;  %v3174_v19 = vpop.f32.mrb[24].mxu0 }
 0x3a0   : > { %v1356_v21 = vadd.f32 %v3174_v19, %v2814_v59  ;;  %v1350_v22 = vpop.f32.mrb[25].mxu0 }
 0x3a1   : > { %v1351_v23 = vadd.f32 %v2814_v59, %v1350_v22  ;;  %3209 = vmatprep.mubr.msk.f32.mxu1 %vm1420_vm2, %v1395_v18 }
 0x3a2   : > { %3210 = vmatmul.mubr.msk.f32.gmra.mrb[22].mxu1 %vm1420_vm2, %v1396_v20  ;;  %v1398_v26 = vmax.f32 %v1356_v21, 0.0 }
 0x3a3   : > { %v1397_v24 = vmax.f32 %v1351_v23, 0.0  ;;  %v3177_v25 = vpop.f32.mrb[26].mxu0 }
 0x3a4   : > { %v1366_v27 = vadd.f32 %v3177_v25, %v2814_v59  ;;  %v1360_v28 = vpop.f32.mrb[27].mxu0 }
 0x3a5   : > { %v1361_v29 = vadd.f32 %v2814_v59, %v1360_v28  ;;  %3212 = vmatprep.mubr.msk.f32.mxu1 %vm1420_vm2, %v1397_v24 }
 0x3a6   : > { %3213 = vmatmul.mubr.msk.f32.gmra.mrb[24].mxu1 %vm1420_vm2, %v1398_v26  ;;  %v1400_v32 = vmax.f32 %v1366_v27, 0.0 }
 0x3a7   : > { %v1399_v30 = vmax.f32 %v1361_v29, 0.0  ;;  %v3180_v31 = vpop.f32.mrb[28].mxu0  ;;  %v2919_v29 = vld [vmem:[%s4441_s16 + $0x8] sm:$0xff]  }
 0x3a8   : > { %v1376_v33 = vadd.f32 %v3180_v31, %v2814_v59  ;;  %v1370_v34 = vpop.f32.mrb[29].mxu0  ;;  %v2909_v31 = vunpack.c.l.bf16 %v2919_v29 }
 0x3a9   : > { %v1371_v35 = vadd.f32 %v2814_v59, %v1370_v34  ;;  %3215 = vmatprep.mubr.msk.f32.mxu1 %vm1420_vm2, %v1399_v30  ;;  %v2906_v30 = vunpack.c.h.bf16 %v4444_v44  ;;  %v1869_v44 = vld [vmem:[%s4637_s13 + $0x10] sm:$0xff] }
 0x3aa   : > { %3216 = vmatmul.mubr.msk.f32.gmra.mrb[26].mxu1 %vm1420_vm2, %v1400_v32  ;;  %v1402_v38 = vmax.f32 %v1376_v33, 0.0  ;;  %v2920_v32 = vld [vmem:[%s4441_s16 + $0x10] sm:$0xff]   ;;  %v2910_v33 = vunpack.c.h.bf16 %v2919_v29  ;;  %v3465_v48 = vpack.c.bf16 %v1870_v47, %v1869_v44 }
 0x3ab   : > { %v1401_v36 = vmax.f32 %v1371_v35, 0.0  ;;  %v3183_v37 = vpop.f32.mrb[30].mxu0  ;;  %v2913_v34 = vunpack.c.l.bf16 %v2920_v32  ;;  %v2921_v35 = vld [vmem:[%s4441_s16 + $0x18] sm:$0xff]   ;;  %s2775_s16 = sshll.u32 %s716_s22, 2 }
 0x3ac   : > { %v1386_v39 = vadd.f32 %v3183_v37, %v2814_v59  ;;  %v1380_v40 = vpop.f32.mrb[31].mxu0  ;;  %v2917_v37 = vunpack.c.l.bf16 %v2921_v35  ;;  %s718_s2 = scalar_lea.vmem [#allocation16], %s2775_s16 }
 0x3ad   : > { %v1381_v41 = vadd.f32 %v2814_v59, %v1380_v40  ;;  %3218 = vmatprep.mubr.msk.f32.mxu1 %vm1420_vm2, %v1401_v36  ;;  %v2914_v36 = vunpack.c.h.bf16 %v2920_v32  ;;  %s2605_s26 = sshll.u32 %s718_s2, 4  ;;  %s4584_s26 = int_to_ptr.vmem [resolvable:$true] %s2605_s26 }
 0x3ae   : > { %3219 = vmatmul.mubr.msk.f32.gmra.mrb[28].mxu1 %vm1420_vm2, %v1402_v38  ;;  %v1404_v43 = vmax.f32 %v1386_v39, 0.0  ;;  %v2918_v38 = vunpack.c.h.bf16 %v2921_v35  ;;  %s3861_s6 = scalar_lea.vmem %s4584_s26, 64  ;;  %p3868_p6 = scmp.lt.s32.totalorder %s4584_s26, %s3866_s19 }
 0x3af   : > { %v1403_v42 = vmax.f32 %v1381_v41, 0.0  ;;  %p3862_p11 = scmp.ne.s32.totalorder %s4584_s26, %s3861_s6 }
 0x3b1   : > { %3221 = vmatprep.mubr.msk.f32.mxu1 %vm1420_vm2, %v1403_v42  ;;  %v1867_v42 = vld [vmem:[%s4637_s13] sm:$0xff]  ;;  %p3863_p0 = pnand %p3862_p11, %p4706_p13 }
 0x3b2   : > { %3222 = vmatmul.mubr.msk.f32.gmra.mrb[30].mxu1 %vm1420_vm2, %v1404_v43  ;;  %v1868_v43 = vld [vmem:[%s4637_s13 + $0x8] sm:$0xff] }
 0x3b3   : > { %v3461_v46 = vpack.c.bf16 %v1868_v43, %v1867_v42  ;;  %p3864_p1 = pneg %p3863_p0 }
 0x469   : > { %v3202_v53 = vpop.f32.mrb[16].mxu1 }
 0x46a   : > { %v1541_v54 = vadd.f32 %v3202_v53, %v2831_v52  ;;  %v1535_v55 = vpop.f32.mrb[17].mxu1  ;;  %v2866_v53 = vld [vmem:[%s4635_s11 + $0x20] sm:$0xff] }
 0x46b   : > { %v1536_v56 = vadd.f32 %v2831_v52, %v1535_v55 }
 0x46d   : > { %v3421_v57 = vpack.c.bf16 %v1541_v54, %v1536_v56  ;;  %v3205_v58 = vpop.f32.mrb[18].mxu1  ;;  %v2867_v54 = vld [vmem:[%s4635_s11 + $0x28] sm:$0xff]  ;;  %v2848_v56 = vld [vmem:[#allocation13] ss:$0 sm:$0xff] }
 0x46e   : > { %v1551_v59 = vadd.f32 %v3205_v58, %v2831_v52  ;;  %v1545_v60 = vpop.f32.mrb[19].mxu1  ;;  %v3469_v55 = vpack.c.bf16 %v2867_v54, %v2866_v53 }
 0x46f   : > { %v1546_v61 = vadd.f32 %v2831_v52, %v1545_v60  ;;  %3422 = vmatprep.subr.bf16.mxu0 %v3421_v57 }
 0x470   : > { %3424 = vmatpush3.bf16.msra.mxu0 %v3421_v57  ;;  %3470 = vmatprep.subr.bf16.mxu1 %v3469_v55 }
 0x471   : > { %v3425_v62 = vpack.c.bf16 %v1551_v59, %v1546_v61  ;;  %v3208_v63 = vpop.f32.mrb[20].mxu1 }
 0x472   : > { %v1561_v0 = vadd.f32 %v3208_v63, %v2831_v52  ;;  %v1555_v1 = vpop.f32.mrb[21].mxu1 }
 0x473   : > { %v1556_v2 = vadd.f32 %v2831_v52, %v1555_v1  ;;  %3426 = vmatprep.subr.bf16.mxu0 %v3425_v62 }
 0x474   : > { %3428 = vmatpush3.bf16.msra.mxu0 %v3425_v62 }
 0x475   : > { %v3429_v3 = vpack.c.bf16 %v1561_v0, %v1556_v2  ;;  %v3211_v4 = vpop.f32.mrb[22].mxu1 }
 0x476   : > { %v1571_v5 = vadd.f32 %v3211_v4, %v2831_v52  ;;  %v1565_v6 = vpop.f32.mrb[23].mxu1 }
 0x477   : > { %v1566_v7 = vadd.f32 %v2831_v52, %v1565_v6  ;;  %3430 = vmatprep.subr.bf16.mxu0 %v3429_v3 }
 0x478   : > { %3432 = vmatpush3.bf16.msra.mxu0 %v3429_v3 }
 0x479   : > { %v3433_v8 = vpack.c.bf16 %v1571_v5, %v1566_v7  ;;  %v3214_v9 = vpop.f32.mrb[24].mxu1 }
 0x47a   : > { %v1581_v10 = vadd.f32 %v3214_v9, %v2831_v52  ;;  %v1575_v11 = vpop.f32.mrb[25].mxu1 }
 0x47b   : > { %v1576_v12 = vadd.f32 %v2831_v52, %v1575_v11  ;;  %3434 = vmatprep.subr.bf16.mxu0 %v3433_v8 }
 0x47c   : > { %3436 = vmatpush3.bf16.msra.mxu0 %v3433_v8 }
 0x47d   : > { %v3437_v13 = vpack.c.bf16 %v1581_v10, %v1576_v12  ;;  %v3217_v14 = vpop.f32.mrb[26].mxu1 }
 0x47e   : > { %v1591_v15 = vadd.f32 %v3217_v14, %v2831_v52  ;;  %v1585_v16 = vpop.f32.mrb[27].mxu1 }
 0x47f   : > { %v1586_v17 = vadd.f32 %v2831_v52, %v1585_v16  ;;  %3438 = vmatprep.subr.bf16.mxu0 %v3437_v13 }
 0x480   : > { %3440 = vmatpush3.bf16.msra.mxu0 %v3437_v13 }
 0x481   : > { %v3441_v18 = vpack.c.bf16 %v1591_v15, %v1586_v17  ;;  %v3220_v19 = vpop.f32.mrb[28].mxu1  ;;  %v2868_v17 = vld [vmem:[%s4635_s11 + $0x30] sm:$0xff] }
 0x482   : > { %v1601_v20 = vadd.f32 %v3220_v19, %v2831_v52  ;;  %v1595_v21 = vpop.f32.mrb[29].mxu1 }
 0x483   : > { %v1596_v22 = vadd.f32 %v2831_v52, %v1595_v21  ;;  %3442 = vmatprep.subr.bf16.mxu0 %v3441_v18  ;;  %v2880_v21 = vld [vmem:[%s4637_s13 + $0x28] sm:$0xff] }
 0x484   : > { %3444 = vmatpush3.bf16.msra.mxu0 %v3441_v18  ;;  %v2869_v18 = vld [vmem:[%s4635_s11 + $0x38] sm:$0xff] }
 0x485   : > { %v3445_v23 = vpack.c.bf16 %v1601_v20, %v1596_v22  ;;  %v3223_v24 = vpop.f32.mrb[30].mxu1  ;;  %v3473_v19 = vpack.c.bf16 %v2869_v18, %v2868_v17  ;;  %v2879_v20 = vld [vmem:[%s4637_s13 + $0x20] sm:$0xff]  ;;  %v2881_v22 = vld [vmem:[%s4637_s13 + $0x30] sm:$0xff] }
 0x486   : > { %v1611_v25 = vadd.f32 %v3223_v24, %v2831_v52  ;;  %v1605_v26 = vpop.f32.mrb[31].mxu1  ;;  %v2882_v24 = vld [vmem:[%s4637_s13 + $0x38] sm:$0xff] }
 0x487   : > { %v1606_v27 = vadd.f32 %v2831_v52, %v1605_v26  ;;  %3446 = vmatprep.subr.bf16.mxu0 %v3445_v23  ;;  %v2857_v26 = vld [vmem:[%s4638_s14] ss:$0 sm:$0xff] }
 0x488   : > { %3448 = vmatpush3.bf16.msra.mxu0 %v3445_v23  ;;  %v3477_v23 = vpack.c.bf16 %v2880_v21, %v2879_v20 }
 0x489   : > { %v3449_v28 = vpack.c.bf16 %v1611_v25, %v1606_v27  ;;  %v3481_v25 = vpack.c.bf16 %v2882_v24, %v2881_v22 }
 0x48b   : > { %3450 = vmatprep.subr.bf16.mxu0 %v3449_v28 }
 0x48c   : > { %3452 = vmatpush3.bf16.msra.mxu0 %v3449_v28 }
 0x48d   : > { %3462 = vmatprep.subr.bf16.mxu0 %v3461_v46 }
 0x48f   : > { %3257 = vmatmul.mubr.f32.vlgmr.msra.gmra.mrb[32].mxu0 %v2906_v30 }
 0x490   : > { %3259 = vmatprep.mubr.f32.mxu0 %v2909_v31  ;;  %3464 = vmatpush3.bf16.msra.mxu0 %v3461_v46 }
 0x491   : > { %3466 = vmatprep.subr.bf16.mxu0 %v3465_v48 }
 0x493   : > { %3260 = vmatmul.mubr.f32.gmra.mrb[34].mxu0 %v2910_v33 }
 0x494   : > { %3262 = vmatprep.mubr.f32.mxu0 %v2913_v34  ;;  %3468 = vmatpush3.bf16.msra.mxu0 %v3465_v48 }
 0x495   : > { %3478 = vmatprep.subr.bf16.mxu0 %v3477_v23 }
 0x497   : > { %3263 = vmatmul.mubr.f32.gmra.mrb[36].mxu0 %v2914_v36 }
 0x498   : > { %3265 = vmatprep.mubr.f32.mxu0 %v2917_v37 }
 0x49b   : > { %3266 = vmatmul.mubr.f32.gmra.mrb[38].mxu0 %v2918_v38 }
 0x562   : > { %v3258_v39 = vpop.f32.mrb[32].mxu0 }
 0x563   : > { %v1680_v40 = vpop.f32.mrb[33].mxu0 }
 0x564   : > { %2015 = vrot.lane.b32.xlu0 %v1680_v40, %s3957_s28  ;;  %3276 = vmatprep.mubr.msk.f32.mxu1 %vm991_vm1, %v1680_v40 }
 0x565   : > { %3277 = vmatmul.mubr.msk.f32.vlgmr.msra.gmra.mrb[32].mxu1 %vm991_vm1, %v3258_v39 }
 0x566   : > { %v3261_v41 = vpop.f32.mrb[34].mxu0  ;;  %3472 = vmatpush3.bf16.msra.mxu1 %v3469_v55 }
 0x567   : > { %v1690_v45 = vpop.f32.mrb[35].mxu0  ;;  %3474 = vmatprep.subr.bf16.mxu1 %v3473_v19 }
 0x568   : > { %2017 = vrot.lane.b32.xlu0 %v3258_v39, %s3957_s28  ;;  %2019 = vrot.lane.b32.xlu1 %v1690_v45, %s3957_s28 }
 0x569   : > { %3279 = vmatprep.mubr.msk.f32.mxu1 %vm991_vm1, %v1690_v45 }
 0x56a   : > { %3280 = vmatmul.mubr.msk.f32.gmra.mrb[34].mxu1 %vm991_vm1, %v3261_v41  ;;  %v3264_v49 = vpop.f32.mrb[36].mxu0 }
 0x56b   : > { %v1700_v50 = vpop.f32.mrb[37].mxu0  ;;  %3476 = vmatpush3.bf16.msra.mxu1 %v3473_v19 }
 0x56c   : > { %2021 = vrot.lane.b32.xlu1 %v3261_v41, %s3957_s28  ;;  %2023 = vrot.lane.b32.xlu0 %v1700_v50, %s3957_s28 }
 0x56d   : > { %3282 = vmatprep.mubr.msk.f32.mxu1 %vm991_vm1, %v1700_v50 }
 0x56e   : > { %3283 = vmatmul.mubr.msk.f32.gmra.mrb[36].mxu1 %vm991_vm1, %v3264_v49  ;;  %v3267_v51 = vpop.f32.mrb[38].mxu0 }
 0x56f   : > { %v1710_v52 = vpop.f32.mrb[39].mxu0 }
 0x570   : > { %2025 = vrot.lane.b32.xlu1 %v3264_v49, %s3957_s28  ;;  %2027 = vrot.lane.b32.xlu0 %v1710_v52, %s3957_s28 }
 0x571   : > { %3285 = vmatprep.mubr.msk.f32.mxu1 %vm991_vm1, %v1710_v52 }
 0x572   : > { %3286 = vmatmul.mubr.msk.f32.gmra.mrb[38].mxu1 %vm991_vm1, %v3267_v51 }
 0x574   : > { %2029 = vrot.lane.b32.xlu1 %v3267_v51, %s3957_s28  ;;  %s4705_s28 = sld [smem:[#allocation38_spill]] }
 0x57a   : > { %s4582_s7 = scalar_lea.hbm %s4705_s28, %s2899_s23 }
 0x5d6   : > { %v2016_v27 = vpop.permute.xlu0 %2015 }
 0x5da   : > { %v2020_v29 = vpop.permute.xlu1 %2019  ;;  %v2018_v36 = vpop.permute.xlu0 %2017 }
 0x5de   : > { %v2022_v40 = vpop.permute.xlu1 %2021  ;;  %v2024_v50 = vpop.permute.xlu0 %2023 }
 0x5e2   : > { %v2026_v53 = vpop.permute.xlu1 %2025 }
 0x638   : > { %v3278_v57 = vpop.f32.mrb[32].mxu1 }
 0x639   : > { %v1826_v58 = vadd.f32 %v3278_v57, %v2848_v56  ;;  %v1820_v59 = vpop.f32.mrb[33].mxu1 }
 0x63a   : > { %v1821_v60 = vadd.f32 %v2848_v56, %v1820_v59 }
 0x63b   : > { %v1860_v62 = vmax.f32 %v1826_v58, 0.0 }
 0x63c   : > { %v1859_v61 = vmax.f32 %v1821_v60, 0.0 }
 0x63d   : > { %v3281_v63 = vpop.f32.mrb[34].mxu1 }
 0x63e   : > { %v1836_v0 = vadd.f32 %v3281_v63, %v2848_v56  ;;  %v1830_v1 = vpop.f32.mrb[35].mxu1  ;;  %3296 = vmatprep.mubr.msk.f32.mxu0 %vm991_vm1, %v1859_v61  ;;  %v2028_v63 = vpop.permute.xlu0 %2027 }
 0x63f   : > { %v1831_v2 = vadd.f32 %v2848_v56, %v1830_v1  ;;  %3297 = vmatmul.mubr.msk.f32.vlgmr.msra.gmra.mrb[40].mxu0 %vm991_vm1, %v1860_v62 }
 0x640   : > { %v1862_v5 = vmax.f32 %v1836_v0, 0.0  ;;  %3480 = vmatpush3.bf16.msra.mxu0 %v3477_v23  ;;  %v2030_v0 = vpop.permute.xlu1 %2029 }
 0x641   : > { %v1861_v3 = vmax.f32 %v1831_v2, 0.0  ;;  %v3284_v4 = vpop.f32.mrb[36].mxu1  ;;  %3482 = vmatprep.subr.bf16.mxu0 %v3481_v25 }
 0x642   : > { %v1846_v6 = vadd.f32 %v3284_v4, %v2848_v56  ;;  %v1840_v7 = vpop.f32.mrb[37].mxu1 }
 0x643   : > { %v1841_v8 = vadd.f32 %v2848_v56, %v1840_v7  ;;  %3299 = vmatprep.mubr.msk.f32.mxu0 %vm991_vm1, %v1861_v3  ;;  %v2870_v3 = vld [vmem:[#allocation13 + $0x1] ss:$0 sm:$0xff] }
 0x644   : > { %3300 = vmatmul.mubr.msk.f32.gmra.mrb[42].mxu0 %vm991_vm1, %v1862_v5  ;;  %v1864_v11 = vmax.f32 %v1846_v6, 0.0 }
 0x645   : > { %v1863_v9 = vmax.f32 %v1841_v8, 0.0  ;;  %v3287_v10 = vpop.f32.mrb[38].mxu1  ;;  %3484 = vmatpush3.bf16.msra.mxu0 %v3481_v25 }
 0x646   : > { %v1856_v12 = vadd.f32 %v3287_v10, %v2848_v56  ;;  %v1850_v13 = vpop.f32.mrb[39].mxu1 }
 0x647   : > { %v1851_v14 = vadd.f32 %v2848_v56, %v1850_v13  ;;  %3302 = vmatprep.mubr.msk.f32.mxu0 %vm991_vm1, %v1863_v9 }
 0x648   : > { %3303 = vmatmul.mubr.msk.f32.gmra.mrb[44].mxu0 %vm991_vm1, %v1864_v11  ;;  %v1866_v16 = vmax.f32 %v1856_v12, 0.0 }
 0x649   : > { %v1865_v15 = vmax.f32 %v1851_v14, 0.0 }
 0x64b   : > { %3305 = vmatprep.mubr.msk.f32.mxu0 %vm991_vm1, %v1865_v15 }
 0x64c   : > { %3306 = vmatmul.mubr.msk.f32.gmra.mrb[46].mxu0 %vm991_vm1, %v1866_v16 }
 0x712   : > { %v3298_v28 = vpop.f32.mrb[40].mxu0 }
 0x713   : > { %v1974_v30 = vadd.f32 %v3298_v28, %v2857_v26  ;;  %v1968_v31 = vpop.f32.mrb[41].mxu0  ;;  %v3958_v28 = vmov 0.0|0.0  }
 0x714   : > { %v1969_v32 = vadd.f32 %v2857_v26, %v1968_v31  ;;  %3485 = vmatprep.subr.bf16.mxu1 %v3958_v28  ;;  %3503 = vmatprep.subr.bf16.mxu0 %v3958_v28 }
 0x715   : > { %v2008_v33 = vmax.f32 %v1974_v30, 0.0  ;;  %v2884_v30 = vld [vmem:[%s4638_s14 + $0x1] ss:$0 sm:$0xff] }
 0x716   : > { %v2007_v34 = vmax.f32 %v1969_v32, 0.0 }
 0x717   : > { %v3301_v35 = vpop.f32.mrb[42].mxu0  ;;  %v2040_v41 = vmul.f32 %v2018_v36, %v2008_v33 }
 0x718   : > { %v2039_v37 = vmul.f32 %v2016_v27, %v2007_v34  ;;  %v1984_v38 = vadd.f32 %v3301_v35, %v2857_v26  ;;  %v1978_v39 = vpop.f32.mrb[43].mxu0 }
 0x719   : > { %v1979_v42 = vadd.f32 %v2857_v26, %v1978_v39 }
 0x71a   : > { %v2010_v43 = vmax.f32 %v1984_v38, 0.0  ;;  %3316 = vmatprep.mubr.msk.f32.mxu1 %vm991_vm1, %v2039_v37 }
 0x71b   : > { %v2009_v44 = vmax.f32 %v1979_v42, 0.0  ;;  %v3304_v45 = vpop.f32.mrb[44].mxu0  ;;  %3317 = vmatmul.mubr.msk.f32.vlgmr.msra.gmra.mrb[40].mxu1 %vm991_vm1, %v2040_v41 }
 0x71c   : > { %v1994_v46 = vadd.f32 %v3304_v45, %v2857_v26  ;;  %v1988_v47 = vpop.f32.mrb[45].mxu0  ;;  %v2042_v51 = vmul.f32 %v2022_v40, %v2010_v43 }
 0x71d   : > { %v2041_v48 = vmul.f32 %v2020_v29, %v2009_v44  ;;  %v1989_v49 = vadd.f32 %v2857_v26, %v1988_v47  ;;  %v3960_v29 = vmov 0.0  }
 0x71e   : > { %v2012_v52 = vmax.f32 %v1994_v46, 0.0 }
 0x71f   : > { %v2011_v54 = vmax.f32 %v1989_v49, 0.0  ;;  %v3307_v55 = vpop.f32.mrb[46].mxu0  ;;  %3319 = vmatprep.mubr.msk.f32.mxu1 %vm991_vm1, %v2041_v48 }
 0x720   : > { %v2004_v56 = vadd.f32 %v3307_v55, %v2857_v26  ;;  %v1998_v57 = vpop.f32.mrb[47].mxu0  ;;  %3320 = vmatmul.mubr.msk.f32.gmra.mrb[42].mxu1 %vm991_vm1, %v2042_v51  ;;  %v2044_v60 = vmul.f32 %v2026_v53, %v2012_v52 }
 0x721   : > { %v2043_v58 = vmul.f32 %v2024_v50, %v2011_v54  ;;  %v1999_v59 = vadd.f32 %v2857_v26, %v1998_v57 }
 0x722   : > { %v2014_v61 = vmax.f32 %v2004_v56, 0.0 }
 0x723   : > { %v2013_v62 = vmax.f32 %v1999_v59, 0.0  ;;  %3322 = vmatprep.mubr.msk.f32.mxu1 %vm991_vm1, %v2043_v58  ;;  %v2421_v58 = vld [vmem:[%s4639_s15] sm:$0xff]  ;;  %v2422_v59 = vld [vmem:[%s4639_s15 + $0x8] sm:$0xff] }
 0x724   : > { %3323 = vmatmul.mubr.msk.f32.gmra.mrb[44].mxu1 %vm991_vm1, %v2044_v60  ;;  %v2046_v2 = vmul.f32 %v2030_v0, %v2014_v61  ;;  %v2347_v61 = vld [vmem:[#allocation2] sm:$0xf]  ;;  %v2424_v0 = vld [vmem:[%s4639_s15 + $0x18] sm:$0xff] }
 0x725   : > { %v2045_v1 = vmul.f32 %v2028_v63, %v2013_v62  ;;  %v3498_v62 = vpack.c.bf16 %v2422_v59, %v2421_v58  ;;  %v2423_v63 = vld [vmem:[%s4639_s15 + $0x10] sm:$0xff] }
 0x727   : > { %3325 = vmatprep.mubr.msk.f32.mxu1 %vm991_vm1, %v2045_v1  ;;  %v3501_v1 = vpack.c.bf16 %v2424_v0, %v2423_v63 }
 0x728   : > { %3326 = vmatmul.mubr.msk.f32.gmra.mrb[46].mxu1 %vm991_vm1, %v2046_v2  ;;  %v2506_v2 = vld [vmem:[#allocation14] sm:$0xff] }
 0x729   : > { %3364 = vmatprep.mubr.msk.f32.mxu1 %vm3959_vm3, %v3960_v29 }
 0x7ee   : > { %v3318_v4 = vpop.f32.mrb[40].mxu1 }
 0x7ef   : > { %v2156_v5 = vadd.f32 %v3318_v4, %v2870_v3  ;;  %v2150_v6 = vpop.f32.mrb[41].mxu1  ;;  %v2508_v4 = vld [vmem:[#allocation14 + $0x10] sm:$0xff] }
 0x7f0   : > { %v2151_v7 = vadd.f32 %v2870_v3, %v2150_v6  ;;  %v2509_v6 = vld [vmem:[#allocation14 + $0x18] sm:$0xff] }
 0x7f1   : > { %v2190_v9 = vmax.f32 %v2156_v5, 0.0 }
 0x7f2   : > { %v2189_v8 = vmax.f32 %v2151_v7, 0.0  ;;  %v3507_v7 = vpack.c.bf16 %v2509_v6, %v2508_v4 }
 0x7f3   : > { %v3321_v10 = vpop.f32.mrb[42].mxu1 }
 0x7f4   : > { %v2166_v11 = vadd.f32 %v3321_v10, %v2870_v3  ;;  %v2160_v12 = vpop.f32.mrb[43].mxu1  ;;  %3336 = vmatprep.mubr.msk.f32.mxu0 %vm991_vm1, %v2189_v8  ;;  %v2894_v10 = vld [vmem:[%s4702_s27] ss:$0 sm:$0xff]  ;;  %s3867_s27 = scalar_lea.vmem %s3866_s19, 128 }
 0x7f5   : > { %v2161_v13 = vadd.f32 %v2870_v3, %v2160_v12  ;;  %3337 = vmatmul.mubr.msk.f32.vlgmr.msra.gmra.mrb[48].mxu0 %vm991_vm1, %v2190_v9  ;;  %p3869_p5 = scmp.lt.s32.totalorder %s3867_s27, %s3861_s6 }
 0x7f6   : > { %v2192_v16 = vmax.f32 %v2166_v11, 0.0 }
 0x7f7   : > { %v2191_v14 = vmax.f32 %v2161_v13, 0.0  ;;  %v3324_v15 = vpop.f32.mrb[44].mxu1  ;;  %p3870_p9 = por %p3869_p5, %p3868_p6 }
 0x7f8   : > { %v2176_v17 = vadd.f32 %v3324_v15, %v2870_v3  ;;  %v2170_v18 = vpop.f32.mrb[45].mxu1  ;;  %v2896_v15 = vld [vmem:[%s4704_s21] ss:$0 sm:$0xff] }
 0x7f9   : > { %v2171_v19 = vadd.f32 %v2870_v3, %v2170_v18  ;;  %3339 = vmatprep.mubr.msk.f32.mxu0 %vm991_vm1, %v2191_v14  ;;  %p3871_p12 = pnand %p3870_p9, %p3864_p1 }
 0x7fa   : > { %3340 = vmatmul.mubr.msk.f32.gmra.mrb[50].mxu0 %vm991_vm1, %v2192_v16  ;;  %v2194_v22 = vmax.f32 %v2176_v17, 0.0 }
 0x7fb   : > { %v2193_v20 = vmax.f32 %v2171_v19, 0.0  ;;  %v3327_v21 = vpop.f32.mrb[46].mxu1 }
 0x7fc   : > { %v2186_v23 = vadd.f32 %v3327_v21, %v2870_v3  ;;  %v2180_v24 = vpop.f32.mrb[47].mxu1 }
 0x7fd   : > { %v2181_v25 = vadd.f32 %v2870_v3, %v2180_v24  ;;  %3342 = vmatprep.mubr.msk.f32.mxu0 %vm991_vm1, %v2193_v20  ;;  %v2507_v3 = vld [vmem:[#allocation14 + $0x8] sm:$0xff] }
 0x7fe   : > { %3343 = vmatmul.mubr.msk.f32.gmra.mrb[52].mxu0 %vm991_vm1, %v2194_v22  ;;  %v2196_v27 = vmax.f32 %v2186_v23, 0.0  ;;  %v3504_v5 = vpack.c.bf16 %v2507_v3, %v2506_v2 }
 0x7ff   : > { %v2195_v26 = vmax.f32 %v2181_v25, 0.0 }
 0x800   : > { %3505 = vmatpush3.bf16.msra.mxu0 %v3504_v5 }
 0x801   : > { %3345 = vmatprep.mubr.msk.f32.mxu0 %vm991_vm1, %v2195_v26  ;;  %3506 = vmatprep.subr.bf16.mxu0 %v3958_v28 }
 0x802   : > { %3346 = vmatmul.mubr.msk.f32.gmra.mrb[54].mxu0 %vm991_vm1, %v2196_v27 }
 0x803   : > { %3386 = vmatprep.mubr.msk.f32.mxu0 %vm3959_vm3, %v3960_v29 }
 0x804   : > { %3508 = vmatpush3.bf16.msra.mxu0 %v3507_v7 }
 0x8c8   : > { %v3338_v31 = vpop.f32.mrb[48].mxu0 }
 0x8c9   : > { %v2306_v32 = vadd.f32 %v3338_v31, %v2884_v30  ;;  %v2300_v33 = vpop.f32.mrb[49].mxu0 }
 0x8ca   : > { %v2301_v34 = vadd.f32 %v2884_v30, %v2300_v33 }
 0x8cb   : > { %v2340_v35 = vmax.f32 %v2306_v32, 0.0 }
 0x8cc   : > { %v2339_v36 = vmax.f32 %v2301_v34, 0.0 }
 0x8cd   : > { %v3341_v37 = vpop.f32.mrb[50].mxu0 }
 0x8ce   : > { %v3486_v38 = vpack.c.bf16 %v2340_v35, %v2339_v36  ;;  %v2316_v39 = vadd.f32 %v3341_v37, %v2884_v30  ;;  %v2310_v40 = vpop.f32.mrb[51].mxu0 }
 0x8cf   : > { %v2311_v41 = vadd.f32 %v2884_v30, %v2310_v40 }
 0x8d0   : > { %v2342_v42 = vmax.f32 %v2316_v39, 0.0  ;;  %3487 = vmatpush3.bf16.msra.mxu1 %v3486_v38 }
 0x8d1   : > { %v2341_v43 = vmax.f32 %v2311_v41, 0.0  ;;  %v3344_v44 = vpop.f32.mrb[52].mxu0  ;;  %3488 = vmatprep.subr.bf16.mxu1 %v3958_v28 }
 0x8d2   : > { %v2326_v45 = vadd.f32 %v3344_v44, %v2884_v30  ;;  %v2320_v46 = vpop.f32.mrb[53].mxu0 }
 0x8d3   : > { %v3489_v47 = vpack.c.bf16 %v2342_v42, %v2341_v43  ;;  %v2321_v48 = vadd.f32 %v2884_v30, %v2320_v46 }
 0x8d4   : > { %v2344_v49 = vmax.f32 %v2326_v45, 0.0 }
 0x8d5   : > { %v2343_v50 = vmax.f32 %v2321_v48, 0.0  ;;  %v3347_v51 = vpop.f32.mrb[54].mxu0  ;;  %3490 = vmatpush3.bf16.msra.mxu1 %v3489_v47 }
 0x8d6   : > { %v2336_v52 = vadd.f32 %v3347_v51, %v2884_v30  ;;  %v2330_v53 = vpop.f32.mrb[55].mxu0  ;;  %3491 = vmatprep.subr.bf16.mxu1 %v3958_v28 }
 0x8d7   : > { %v3492_v54 = vpack.c.bf16 %v2344_v49, %v2343_v50  ;;  %v2331_v55 = vadd.f32 %v2884_v30, %v2330_v53 }
 0x8d8   : > { %v2346_v56 = vmax.f32 %v2336_v52, 0.0 }
 0x8d9   : > { %v2345_v57 = vmax.f32 %v2331_v55, 0.0  ;;  %3493 = vmatpush3.bf16.msra.mxu1 %v3492_v54 }
 0x8da   : > { %3494 = vmatprep.subr.bf16.mxu1 %v3958_v28 }
 0x8db   : > { %v3495_v60 = vpack.c.bf16 %v2346_v56, %v2345_v57 }
 0x8dd   : > { %3496 = vmatpush3.bf16.msra.mxu1 %v3495_v60 }
 0x8de   : > { %3497 = vmatprep.subr.bf16.mxu1 %v3958_v28 }
 0x8e0   : > { %3365 = vmatmul.mubr.msk.f32.vlgmr.msra.gmra.mrb[48].mxu1 %vm1420_vm2, %v2347_v61 }
 0x8e1   : > { %3499 = vmatpush3.bf16.msra.mxu1 %v3498_v62  ;;  %3375 = vmatprep.mubr.msk.f32.mxu1 %vm3959_vm3, %v3960_v29 }
 0x8e2   : > { %3500 = vmatprep.subr.bf16.mxu1 %v3958_v28 }
 0x8e5   : > { %3502 = vmatpush3.bf16.msra.mxu1 %v3501_v1 }
 0x9b3   : > { %v2417_v8 = vpop.f32.mrb[48].mxu1 }
 0x9b4   : > { %v3366_v9 = vpop.f32.mrb[49].mxu1  ;;  %3376 = vmatmul.mubr.msk.f32.vlgmr.msra.gmra.mrb[50].mxu1 %vm991_vm1, %v2417_v8 }
 0xa87   : > { %v2501_v11 = vpop.f32.mrb[50].mxu1 }
 0xa88   : > { %v2502_v12 = vadd.f32 %v2894_v10, %v2501_v11  ;;  %v3377_v13 = vpop.f32.mrb[51].mxu1 }
 0xa8a   : > { %v2505_v14 = vmax.f32 %v2502_v12, 0.0 }
 0xa8c   : > { %3387 = vmatmul.mubr.msk.f32.vlgmr.msra.gmra.mrb[56].mxu0 %vm991_vm1, %v2505_v14 }
 0xb5f   : > { %v2586_v16 = vpop.f32.mrb[56].mxu0 }
 0xb60   : > { %v2587_v17 = vadd.f32 %v2896_v15, %v2586_v16  ;;  %v3388_v18 = vpop.f32.mrb[57].mxu0 }
 0xb62   : > { %2590 = vst [vmem:[%s718_s2] sm:$0xf] %v2587_v17 }
 0xb63   : > { %3874 = shalt.err (!%p3871_p12)
}
 0xb64   : > { %s3875_s22 = scalar_lea.hbm %s4582_s7, 64  ;;  %s3879_s29 = scalar_lea.hbm %s4705_s28, 128 }
 0xb65   : > { %p3876_p10 = scmp.ne.s32.totalorder %s4582_s7, %s3875_s22  ;;  %p3880_p4 = scmp.lt.u32.totalorder %s4582_s7, %s4705_s28 }
 0xb66   : > { %p3881_p7 = scmp.lt.u32.totalorder %s3879_s29, %s3875_s22  ;;  %p3883_p11 = scmp.lt.u32.totalorder %s3875_s22, %s4582_s7 }
 0xb67   : > { %p3877_p2 = pnand %p3876_p10, %p4706_p13 }
 0xb68   : > { %p3882_p8 = por %p3881_p7, %p3880_p4 }
 0xb69   : > { %p3878_p3 = pneg %p3877_p2 }
 0xb6a   : > { %p3884_p0 = por %p3883_p11, %p3882_p8 }
 0xb6c   : > { %p3885_p1 = pnand %p3884_p0, %p3878_p3 }
 0xb6e   : > { %3888 = shalt.err (!%p3885_p1)
}
 0xb6f   : > { %3541 = dma.vmem_to_hbm [thread:$0]  (%p4706_p13), %s4584_s26, 64, %s4582_s7, %s2592_s3  }
 0xb70 PF: > { %s4707_s2 = sld [smem:[#allocation25_spill]]  ;;  %s4708_s20 = sld [smem:[#allocation23_spill]] }
 0xb71   : > { %s4709_s25 = sld [smem:[#allocation29_spill]] }
 0xb76   : > { %p3588_p6 = scmp.ge.s32.totalorder %s4707_s2, 2  ;;  %s2617_s6 = sand.u32 1, %s4708_s20  }
 0xb77   : > { %p4710_p5 = scmp.ne.s32.totalorder %s4709_s25, 0  ;;  %s2618_s1 = scalar_lea.sflag [#allocation4], %s2617_s6 }
 0xb79   : > { %p3569_p9 = pnand %p3588_p6, %p4710_p5 }
 0xb7b   : > { %3926 = dma.done.wait (!%p3569_p9), %s2618_s1, 64  }
 0xb7c   : > { %3928 = vsyncadd (!%p3569_p9), %s2618_s1, 4294967232  ;;  %s4711_s21 = sld [smem:[#allocation26_spill]]  ;;  %s4712_s19 = sld [smem:[#allocation24_spill]] }
 0xb7d   : > { %s4713_s20 = sld [smem:[#allocation27_spill]]  ;;  %s4714_s0 = smov %s3935_s30 }
 0xb82   : > { %p34_p12 = scmp.ge.s32.totalorder %s4711_s21, 4   ;;  %s4715_s30 = smov %s4712_s19 }
 0xb84   :  { %36 = sbr.rel (!%p34_p12) target bundleno = 18 (0x12), region = 171 }
 0xb8b   :  { %2623 = vsyncpa [#allocation3], 1 }
 0xb8c   :  { %2625 = vsyncpa [#allocation3 + $0x1], 1 }
 0xb8d   :  { %2626 = vsyncpa [#allocation6], 1 }
 0xb8e   :  { %2627 = vsyncpa [#allocation9], 1 }
 0xb8f   :  { %2628 = vsyncpa [#allocation12], 1 }
 0xb90   :  { %2629 = vsyncpa [#allocation15], 1 }
 0xb91   :  { %2630 = vsyncpa [#allocation4], 1 }
 0xb92   :  { %2632 = vsyncpa [#allocation4 + $0x1], 1 }

</bundles_post_ra>
